<compile_context>
chip_gen: v5e
topology: v5e:2x2
jax: 0.10.0
libtpu: 0.0.40
codegen_flags: <defaults>
</compile_context>

<pallas_src>
import jax
import jax.numpy as jnp
from jax.experimental import pallas as pl
from jax.experimental.pallas import tpu as pltpu

NUM_CLASS = 18

# ---- small, synthetic model hyper-parameters (consistent with the forward) ----
B = 2            # batch
C, H, W = 3, 16, 16
VOCAB = 32       # emb_table rows
E = 32           # embedding dim == LSTM hidden size (both layers)
T = 8            # caption length
FEAT = 1280      # EfficientNet-B1 classifier in_features
HEAD = 64        # efficient_net.classifier output features
LIN = 64         # self.linear output features

BP = 8           # batch padded to one full sublane tile
CLS_PAD = 128    # classifier output padded to one full lane tile

# ---- row offsets inside the packed f32 weight slab ([SLAB_ROWS, 128]) ----
R_IH1 = 0                     # w_ih1_t                      [32,128]
R_HH1 = R_IH1 + E             # w_hh1_t                      [32,128]
R_L2 = R_HH1 + E              # [w_ih2_t ; w_hh2_t]          [64,128]
R_LINCLS = R_L2 + 2 * E       # w_lin_t @ w_cls_lstm (fold)  [64,128]
R_CLSIMG = R_LINCLS + 2 * E   # w_cls_img (lane padded)      [64,128]
R_BIAS = R_CLSIMG + HEAD      # bias block [8,128]: row0=b1, row1=b2, row2=b_cls_eff
SLAB_ROWS = R_BIAS + 8        # 264 (multiple of 8)


def fused_model_kernel(img_ref, emb_ref, w_img_ref, slab_ref, out_ref):
    bp = img_ref.shape[0]                # 8 (padded batch)
    e = E
    t = emb_ref.shape[0] // bp           # timesteps

    # ---- static views into the packed weight slab (one DMA for all small weights) ----
    w_ih1 = slab_ref[R_IH1:R_IH1 + e, :]                  # [32,128]
    w_hh1 = slab_ref[R_HH1:R_HH1 + e, :]                  # [32,128]
    w_l2 = slab_ref[R_L2:R_L2 + 2 * e, :]                 # [64,128] = [W_ih2 ; W_hh2]
    w_lincls = slab_ref[R_LINCLS:R_LINCLS + 2 * e, :]     # [64,128] = w_lin @ w_cls_lstm
    w_clsimg = slab_ref[R_CLSIMG:R_CLSIMG + HEAD, :]      # [64,128]
    bias_blk = slab_ref[R_BIAS:R_BIAS + 8, :]             # [8,128] aligned bias block
    b1 = bias_blk[0:1, :]
    b2 = bias_blk[1:2, :]
    b_cls = bias_blk[2:3, :]

    # ---------------- image branch ----------------
    # TODO(synk): the full pretrained EfficientNet-B1 backbone is not reproduced; a
    # deterministic linear projection stands in.  Backbone projection + head
    # Linear(1280,64) are folded offline into w_img (bf16 stored, f32 math); b_head is
    # folded into the classifier bias.
    net = jnp.dot(img_ref[...], w_img_ref[...].astype(jnp.float32),
                  preferred_element_type=jnp.float32)                  # [8, 64]

    # ---------------- text branch: 2-layer LSTM (batch_first, eval) ----------------
    # Layer-1 input projection hoisted out of the recurrence (emb is time-major).
    xw1 = jnp.dot(emb_ref[...], w_ih1,
                  preferred_element_type=jnp.float32) + b1             # [T*8, 128]

    # gate columns are ordered [i | f | g | o]; only the g field gets tanh
    lane = jax.lax.broadcasted_iota(jnp.int32, (bp, 4 * e), 1)
    g_field = (lane >= 2 * e) & (lane < 3 * e)

    def lstm_cell(gates, c):
        # one full-vreg tanh + one full-vreg sigmoid + select instead of four sub-128
        # transcendental dispatches on the recurrent critical path.
        act = jnp.where(g_field, jnp.tanh(gates), jax.nn.sigmoid(gates))
        i_t = act[:, 0 * e:1 * e]
        f_t = act[:, 1 * e:2 * e]
        g_t = act[:, 2 * e:3 * e]
        o_t = act[:, 3 * e:4 * e]
        c_new = f_t * c + i_t * g_t
        h_new = o_t * jnp.tanh(c_new)
        return h_new, c_new

    h1 = jnp.zeros((bp, e), jnp.float32)
    c1 = jnp.zeros((bp, e), jnp.float32)
    h2 = jnp.zeros((bp, e), jnp.float32)
    c2 = jnp.zeros((bp, e), jnp.float32)
    for ts in range(t):  # T is small and static: unrolled time loop
        g1 = xw1[ts * bp:(ts + 1) * bp, :] + jnp.dot(
            h1, w_hh1, preferred_element_type=jnp.float32)
        h1, c1 = lstm_cell(g1, c1)
        # merged layer-2 matmul: [h1_new | h2_prev] @ [[W_ih2];[W_hh2]]  (one MXU push)
        hcat = jnp.concatenate([h1, h2], axis=1)                        # [8, 64]
        g2 = jnp.dot(hcat, w_l2, preferred_element_type=jnp.float32) + b2
        h2, c2 = lstm_cell(g2, c2)

    hcat = jnp.concatenate([h1, h2], axis=1)                            # [h1_T | h2_T]

    # classifier: image half + (self.linear folded into the lstm half); biases pre-folded.
    out_ref[...] = (jnp.dot(net, w_clsimg, preferred_element_type=jnp.float32)
                    + jnp.dot(hcat, w_lincls, preferred_element_type=jnp.float32)
                    + b_cls)


def init_params(key):
    ks = jax.random.split(key, 16)

    def dense(k, fan_in, shape):
        return jax.random.normal(k, shape, jnp.float32) / jnp.sqrt(float(fan_in))

    return {
        "emb_table": jax.random.normal(ks[0], (VOCAB, E), jnp.float32),
        # stand-in backbone projection: flattened image -> 1280-d features
        "w_feat": dense(ks[1], C * H * W, (C * H * W, FEAT)),
        # efficient_net.classifier[1]: Linear(1280, 64)   (stored as [in, out])
        "w_head": dense(ks[2], FEAT, (FEAT, HEAD)),
        "b_head": dense(ks[3], FEAT, (1, HEAD)),
        # LSTM layer 1: weight_ih_l0 / weight_hh_l0, pre-transposed to [E, 4E]
        "w_ih1_t": dense(ks[4], E, (E, 4 * E)),
        "w_hh1_t": dense(ks[5], E, (E, 4 * E)),
        "b1": dense(ks[6], E, (1, 4 * E)) + dense(ks[7], E, (1, 4 * E)),  # b_ih + b_hh
        # LSTM layer 2
        "w_ih2_t": dense(ks[8], E, (E, 4 * E)),
        "w_hh2_t": dense(ks[9], E, (E, 4 * E)),
        "b2": dense(ks[10], E, (1, 4 * E)) + dense(ks[11], E, (1, 4 * E)),
        # self.linear: Linear(2E, 64)
        "w_lin_t": dense(ks[12], 2 * E, (2 * E, LIN)),
        "b_lin": dense(ks[13], 2 * E, (1, LIN)),
        # self.classifier: Linear(128, 18)
        "w_cls_t": dense(ks[14], HEAD + LIN, (HEAD + LIN, NUM_CLASS)),
        "b_cls": dense(ks[15], HEAD + LIN, (1, NUM_CLASS)),
    }


def prepare_kernel_params(p):
    """One-time offline transforms: fold linears/biases, pad to 128 lanes, pack one slab."""
    f32 = jnp.float32
    # Dropout(0.5) identity in eval -> backbone projection + head fold into one matrix,
    # stored bf16 (the dominant transfer), accumulated in f32 inside the kernel.
    w_img = jnp.dot(p["w_feat"], p["w_head"]).astype(jnp.bfloat16)        # [768, 64]

    # Split self.classifier weight along its input and pad outputs to 128 lanes.
    w_cls_img = jnp.zeros((HEAD, CLS_PAD), f32).at[:, :NUM_CLASS].set(p["w_cls_t"][:HEAD, :])
    w_cls_lstm = jnp.zeros((LIN, CLS_PAD), f32).at[:, :NUM_CLASS].set(p["w_cls_t"][HEAD:, :])
    b_cls = jnp.zeros((1, CLS_PAD), f32).at[:, :NUM_CLASS].set(p["b_cls"])

    # Offline folds (exact: no activation between these Linear layers in the torch model):
    #   self.linear followed by the lstm-half of self.classifier -> one [2E, 128] matrix
    w_lincls = jnp.dot(p["w_lin_t"], w_cls_lstm)                          # [64, 128]
    #   b_head and b_lin only contribute constant offsets through the classifier
    b_cls_eff = b_cls + jnp.dot(p["b_head"], w_cls_img) + jnp.dot(p["b_lin"], w_cls_lstm)

    # layer-2 LSTM input+recurrent weights stacked for the merged [h1|h2] matmul
    w_l2 = jnp.concatenate([p["w_ih2_t"], p["w_hh2_t"]], axis=0)          # [64, 128]

    bias_blk = (jnp.zeros((8, CLS_PAD), f32)
                .at[0:1, :].set(p["b1"])
                .at[1:2, :].set(p["b2"])
                .at[2:3, :].set(b_cls_eff))

    slab = jnp.concatenate([
        p["w_ih1_t"],      # rows   0: 32
        p["w_hh1_t"],      # rows  32: 64
        w_l2,              # rows  64:128
        w_lincls,          # rows 128:192
        w_cls_img,         # rows 192:256
        bias_blk,          # rows 256:264
    ], axis=0)
    assert slab.shape == (SLAB_ROWS, CLS_PAD)

    return {"emb_table": p["emb_table"], "w_img": w_img, "slab": slab}


@jax.jit
def run_model(image, caption, kp):
    b = image.shape[0]
    img_flat = image.reshape(b, -1).astype(jnp.float32)                   # [B, C*H*W]
    img_pad = jnp.zeros((BP, C * H * W), jnp.float32).at[:b, :].set(img_flat)

    emb = kp["emb_table"][caption]                                        # gather (glue), [B,T,E]
    emb_tm = jnp.transpose(emb, (1, 0, 2))                                # time-major [T, B, E]
    emb_pad = (jnp.zeros((T, BP, E), jnp.float32).at[:, :b, :].set(emb_tm)
               .reshape(T * BP, E))                                       # [T*BP, E]

    args = (img_pad, emb_pad, kp["w_img"], kp["slab"])

    # Advisory cost estimate so XLA can overlap this tiny DMA-bound call with neighbours.
    bytes_accessed = int(sum(a.size * a.dtype.itemsize for a in args) + BP * CLS_PAD * 4)
    flops = int(2 * (BP * (C * H * W) * HEAD           # fused image linear
                     + T * BP * E * 4 * E              # hoisted layer-1 input proj
                     + T * BP * E * 4 * E              # layer-1 recurrent matmul
                     + T * BP * 2 * E * 4 * E          # merged layer-2 matmul
                     + BP * HEAD * CLS_PAD             # classifier, image half
                     + BP * 2 * E * CLS_PAD))          # classifier, folded lstm half
    transcendentals = int(2 * T * (2 * BP * 4 * E + BP * E))

    vmem = pl.BlockSpec(memory_space=pltpu.MemorySpace.VMEM)
    # Gridless single-core call (footprint < 0.5 MiB).  If batch ever exceeds BP=8, add a
    # leading "parallel" grid axis over sublane tiles so both v7x TensorCores are used.
    out = pl.pallas_call(
        fused_model_kernel,
        out_shape=jax.ShapeDtypeStruct((BP, CLS_PAD), jnp.float32),
        in_specs=[vmem] * len(args),
        out_specs=vmem,
        cost_estimate=pl.CostEstimate(flops=flops,
                                      transcendentals=transcendentals,
                                      bytes_accessed=bytes_accessed),
    )(*args)
    return out[:b, :NUM_CLASS]


def reference_forward(image, caption, p):
    """Straight-line JAX reference of the same eval-mode forward (mirrors bf16 w_img)."""
    hi = jax.lax.Precision.HIGHEST
    b = image.shape[0]
    img = image.reshape(b, -1).astype(jnp.float32)
    w_img = jnp.dot(p["w_feat"], p["w_head"],
                    precision=hi).astype(jnp.bfloat16).astype(jnp.float32)
    net = jnp.dot(img, w_img, precision=hi) + p["b_head"]

    x = p["emb_table"][caption]                                           # [B, T, E]
    h1 = jnp.zeros((b, E), jnp.float32)
    c1 = jnp.zeros((b, E), jnp.float32)
    h2 = jnp.zeros((b, E), jnp.float32)
    c2 = jnp.zeros((b, E), jnp.float32)

    def cell(g, c):
        i = jax.nn.sigmoid(g[:, 0 * E:1 * E])
        f = jax.nn.sigmoid(g[:, 1 * E:2 * E])
        gg = jnp.tanh(g[:, 2 * E:3 * E])
        o = jax.nn.sigmoid(g[:, 3 * E:4 * E])
        c = f * c + i * gg
        return o * jnp.tanh(c), c

    for ts in range(T):
        xt = x[:, ts, :]
        g1 = (jnp.dot(xt, p["w_ih1_t"], precision=hi)
              + jnp.dot(h1, p["w_hh1_t"], precision=hi) + p["b1"])
        h1, c1 = cell(g1, c1)
        g2 = (jnp.dot(h1, p["w_ih2_t"], precision=hi)
              + jnp.dot(h2, p["w_hh2_t"], precision=hi) + p["b2"])
        h2, c2 = cell(g2, c2)

    lstm_out = jnp.dot(jnp.concatenate([h1, h2], 1), p["w_lin_t"], precision=hi) + p["b_lin"]
    feats = jnp.concatenate([net, lstm_out], 1)
    return jnp.dot(feats, p["w_cls_t"], precision=hi) + p["b_cls"]


if __name__ == "__main__":
    key = jax.random.PRNGKey(0)
    k_params, k_img, k_cap = jax.random.split(key, 3)

    params = init_params(k_params)
    kernel_params = prepare_kernel_params(params)

    image = jax.random.normal(k_img, (B, C, H, W), jnp.float32)           # NCHW like PyTorch
    caption = jax.random.randint(k_cap, (B, T), 0, VOCAB, jnp.int32)

    out = jax.block_until_ready(run_model(image, caption, kernel_params))
    assert out.shape == (B, NUM_CLASS) and out.dtype == jnp.float32

    # Correctness: fused kernel vs. straight-line JAX reference of the same forward pass.
    ref = reference_forward(image, caption, params)
    assert bool(jnp.allclose(out, ref, atol=2e-2, rtol=2e-2))

    print("KERNEL_OK")
</pallas_src>

<mosaic_0001>
module attributes {stable_mosaic.version = 11 : i64} {
  func.func @fused_model_kernel(%arg0: memref<8x768xf32, #tpu.memory_space<vmem>>, %arg1: memref<64x32xf32, #tpu.memory_space<vmem>>, %arg2: memref<768x64xbf16, #tpu.memory_space<vmem>>, %arg3: memref<264x128xf32, #tpu.memory_space<vmem>>, %arg4: memref<8x128xf32, #tpu.memory_space<vmem>>) attributes {dimension_semantics = [], scalar_prefetch = 0 : i64, scratch_operands = 0 : i64, tpu.core_type = #tpu.core_type<tc>} {
    %c0 = arith.constant 0 : index
    %c0_0 = arith.constant 0 : index
    %0 = vector.load %arg3[%c0, %c0_0] : memref<264x128xf32, #tpu.memory_space<vmem>>, vector<32x128xf32>
    %c32 = arith.constant 32 : index
    %c0_1 = arith.constant 0 : index
    %1 = vector.load %arg3[%c32, %c0_1] : memref<264x128xf32, #tpu.memory_space<vmem>>, vector<32x128xf32>
    %c64 = arith.constant 64 : index
    %c0_2 = arith.constant 0 : index
    %2 = vector.load %arg3[%c64, %c0_2] : memref<264x128xf32, #tpu.memory_space<vmem>>, vector<64x128xf32>
    %c128 = arith.constant 128 : index
    %c0_3 = arith.constant 0 : index
    %3 = vector.load %arg3[%c128, %c0_3] : memref<264x128xf32, #tpu.memory_space<vmem>>, vector<64x128xf32>
    %c192 = arith.constant 192 : index
    %c0_4 = arith.constant 0 : index
    %4 = vector.load %arg3[%c192, %c0_4] : memref<264x128xf32, #tpu.memory_space<vmem>>, vector<64x128xf32>
    %c256 = arith.constant 256 : index
    %c0_5 = arith.constant 0 : index
    %5 = vector.load %arg3[%c256, %c0_5] : memref<264x128xf32, #tpu.memory_space<vmem>>, vector<8x128xf32>
    %6 = vector.extract_strided_slice %5 {offsets = [0, 0], sizes = [1, 128], strides = [1, 1]} : vector<8x128xf32> to vector<1x128xf32>
    %7 = vector.extract_strided_slice %5 {offsets = [1, 0], sizes = [1, 128], strides = [1, 1]} : vector<8x128xf32> to vector<1x128xf32>
    %8 = vector.extract_strided_slice %5 {offsets = [2, 0], sizes = [1, 128], strides = [1, 1]} : vector<8x128xf32> to vector<1x128xf32>
    %c0_6 = arith.constant 0 : index
    %c0_7 = arith.constant 0 : index
    %9 = vector.load %arg0[%c0_6, %c0_7] : memref<8x768xf32, #tpu.memory_space<vmem>>, vector<8x768xf32>
    %c0_8 = arith.constant 0 : index
    %c0_9 = arith.constant 0 : index
    %10 = vector.load %arg2[%c0_8, %c0_9] : memref<768x64xbf16, #tpu.memory_space<vmem>>, vector<768x64xbf16>
    %11 = arith.extf %10 : vector<768x64xbf16> to vector<768x64xf32>
    %cst = arith.constant dense<0.000000e+00> : vector<8x64xf32>
    %12 = tpu.matmul %9, %11, %cst {dimension_numbers = #tpu.dot_dimension_numbers<[1], [0], [0], [1], [0, 0, 1, 1], [], []>} : vector<8x768xf32>, vector<768x64xf32>, vector<8x64xf32> -> vector<8x64xf32>
    %c0_10 = arith.constant 0 : index
    %c0_11 = arith.constant 0 : index
    %13 = vector.load %arg1[%c0_10, %c0_11] : memref<64x32xf32, #tpu.memory_space<vmem>>, vector<64x32xf32>
    %cst_12 = arith.constant dense<0.000000e+00> : vector<64x128xf32>
    %14 = tpu.matmul %13, %0, %cst_12 {dimension_numbers = #tpu.dot_dimension_numbers<[1], [0], [0], [1], [0, 0, 1, 1], [], []>} : vector<64x32xf32>, vector<32x128xf32>, vector<64x128xf32> -> vector<64x128xf32>
    %15 = vector.broadcast %6 : vector<1x128xf32> to vector<64x128xf32>
    %16 = arith.addf %14, %15 : vector<64x128xf32>
    %17 = tpu.iota {dimensions = array<i32: 1>} : vector<8x128xi32>
    %c64_i32 = arith.constant 64 : i32
    %18 = vector.broadcast %c64_i32 : i32 to vector<8x128xi32>
    %19 = arith.cmpi sge, %17, %18 : vector<8x128xi32>
    %c96_i32 = arith.constant 96 : i32
    %20 = vector.broadcast %c96_i32 : i32 to vector<8x128xi32>
    %21 = arith.cmpi slt, %17, %20 : vector<8x128xi32>
    %22 = arith.andi %19, %21 : vector<8x128xi1>
    %cst_13 = arith.constant 0.000000e+00 : f32
    %23 = vector.broadcast %cst_13 : f32 to vector<8x32xf32>
    %cst_14 = arith.constant 0.000000e+00 : f32
    %24 = vector.broadcast %cst_14 : f32 to vector<8x32xf32>
    %cst_15 = arith.constant 0.000000e+00 : f32
    %25 = vector.broadcast %cst_15 : f32 to vector<8x32xf32>
    %cst_16 = arith.constant 0.000000e+00 : f32
    %26 = vector.broadcast %cst_16 : f32 to vector<8x32xf32>
    %27 = vector.extract_strided_slice %16 {offsets = [0, 0], sizes = [8, 128], strides = [1, 1]} : vector<64x128xf32> to vector<8x128xf32>
    %cst_17 = arith.constant dense<0.000000e+00> : vector<8x128xf32>
    %28 = tpu.matmul %23, %1, %cst_17 {dimension_numbers = #tpu.dot_dimension_numbers<[1], [0], [0], [1], [0, 0, 1, 1], [], []>} : vector<8x32xf32>, vector<32x128xf32>, vector<8x128xf32> -> vector<8x128xf32>
    %29 = arith.addf %27, %28 : vector<8x128xf32>
    %30 = math.tanh %29 : vector<8x128xf32>
    %31 = arith.negf %29 : vector<8x128xf32>
    %32 = math.exp %31 : vector<8x128xf32>
    %cst_18 = arith.constant 1.000000e+00 : f32
    %33 = vector.broadcast %cst_18 : f32 to vector<8x128xf32>
    %34 = arith.addf %33, %32 : vector<8x128xf32>
    %35 = arith.divf %33, %34 : vector<8x128xf32>
    %36 = arith.select %22, %30, %35 : vector<8x128xi1>, vector<8x128xf32>
    %37 = vector.extract_strided_slice %36 {offsets = [0, 0], sizes = [8, 32], strides = [1, 1]} : vector<8x128xf32> to vector<8x32xf32>
    %38 = vector.extract_strided_slice %36 {offsets = [0, 32], sizes = [8, 32], strides = [1, 1]} : vector<8x128xf32> to vector<8x32xf32>
    %39 = vector.extract_strided_slice %36 {offsets = [0, 64], sizes = [8, 32], strides = [1, 1]} : vector<8x128xf32> to vector<8x32xf32>
    %40 = vector.extract_strided_slice %36 {offsets = [0, 96], sizes = [8, 32], strides = [1, 1]} : vector<8x128xf32> to vector<8x32xf32>
    %41 = arith.mulf %38, %24 : vector<8x32xf32>
    %42 = arith.mulf %37, %39 : vector<8x32xf32>
    %43 = arith.addf %41, %42 : vector<8x32xf32>
    %44 = math.tanh %43 : vector<8x32xf32>
    %45 = arith.mulf %40, %44 : vector<8x32xf32>
    %46 = tpu.concatenate %45, %25 in 1 : vector<8x32xf32>, vector<8x32xf32> -> vector<8x64xf32>
    %cst_19 = arith.constant dense<0.000000e+00> : vector<8x128xf32>
    %47 = tpu.matmul %46, %2, %cst_19 {dimension_numbers = #tpu.dot_dimension_numbers<[1], [0], [0], [1], [0, 0, 1, 1], [], []>} : vector<8x64xf32>, vector<64x128xf32>, vector<8x128xf32> -> vector<8x128xf32>
    %48 = vector.broadcast %7 : vector<1x128xf32> to vector<8x128xf32>
    %49 = arith.addf %47, %48 : vector<8x128xf32>
    %50 = math.tanh %49 : vector<8x128xf32>
    %51 = arith.negf %49 : vector<8x128xf32>
    %52 = math.exp %51 : vector<8x128xf32>
    %cst_20 = arith.constant 1.000000e+00 : f32
    %53 = vector.broadcast %cst_20 : f32 to vector<8x128xf32>
    %54 = arith.addf %53, %52 : vector<8x128xf32>
    %55 = arith.divf %53, %54 : vector<8x128xf32>
    %56 = arith.select %22, %50, %55 : vector<8x128xi1>, vector<8x128xf32>
    %57 = vector.extract_strided_slice %56 {offsets = [0, 0], sizes = [8, 32], strides = [1, 1]} : vector<8x128xf32> to vector<8x32xf32>
    %58 = vector.extract_strided_slice %56 {offsets = [0, 32], sizes = [8, 32], strides = [1, 1]} : vector<8x128xf32> to vector<8x32xf32>
    %59 = vector.extract_strided_slice %56 {offsets = [0, 64], sizes = [8, 32], strides = [1, 1]} : vector<8x128xf32> to vector<8x32xf32>
    %60 = vector.extract_strided_slice %56 {offsets = [0, 96], sizes = [8, 32], strides = [1, 1]} : vector<8x128xf32> to vector<8x32xf32>
    %61 = arith.mulf %58, %26 : vector<8x32xf32>
    %62 = arith.mulf %57, %59 : vector<8x32xf32>
    %63 = arith.addf %61, %62 : vector<8x32xf32>
    %64 = math.tanh %63 : vector<8x32xf32>
    %65 = arith.mulf %60, %64 : vector<8x32xf32>
    %66 = vector.extract_strided_slice %16 {offsets = [8, 0], sizes = [8, 128], strides = [1, 1]} : vector<64x128xf32> to vector<8x128xf32>
    %cst_21 = arith.constant dense<0.000000e+00> : vector<8x128xf32>
    %67 = tpu.matmul %45, %1, %cst_21 {dimension_numbers = #tpu.dot_dimension_numbers<[1], [0], [0], [1], [0, 0, 1, 1], [], []>} : vector<8x32xf32>, vector<32x128xf32>, vector<8x128xf32> -> vector<8x128xf32>
    %68 = arith.addf %66, %67 : vector<8x128xf32>
    %69 = math.tanh %68 : vector<8x128xf32>
    %70 = arith.negf %68 : vector<8x128xf32>
    %71 = math.exp %70 : vector<8x128xf32>
    %cst_22 = arith.constant 1.000000e+00 : f32
    %72 = vector.broadcast %cst_22 : f32 to vector<8x128xf32>
    %73 = arith.addf %72, %71 : vector<8x128xf32>
    %74 = arith.divf %72, %73 : vector<8x128xf32>
    %75 = arith.select %22, %69, %74 : vector<8x128xi1>, vector<8x128xf32>
    %76 = vector.extract_strided_slice %75 {offsets = [0, 0], sizes = [8, 32], strides = [1, 1]} : vector<8x128xf32> to vector<8x32xf32>
    %77 = vector.extract_strided_slice %75 {offsets = [0, 32], sizes = [8, 32], strides = [1, 1]} : vector<8x128xf32> to vector<8x32xf32>
    %78 = vector.extract_strided_slice %75 {offsets = [0, 64], sizes = [8, 32], strides = [1, 1]} : vector<8x128xf32> to vector<8x32xf32>
    %79 = vector.extract_strided_slice %75 {offsets = [0, 96], sizes = [8, 32], strides = [1, 1]} : vector<8x128xf32> to vector<8x32xf32>
    %80 = arith.mulf %77, %43 : vector<8x32xf32>
    %81 = arith.mulf %76, %78 : vector<8x32xf32>
    %82 = arith.addf %80, %81 : vector<8x32xf32>
    %83 = math.tanh %82 : vector<8x32xf32>
    %84 = arith.mulf %79, %83 : vector<8x32xf32>
    %85 = tpu.concatenate %84, %65 in 1 : vector<8x32xf32>, vector<8x32xf32> -> vector<8x64xf32>
    %cst_23 = arith.constant dense<0.000000e+00> : vector<8x128xf32>
    %86 = tpu.matmul %85, %2, %cst_23 {dimension_numbers = #tpu.dot_dimension_numbers<[1], [0], [0], [1], [0, 0, 1, 1], [], []>} : vector<8x64xf32>, vector<64x128xf32>, vector<8x128xf32> -> vector<8x128xf32>
    %87 = vector.broadcast %7 : vector<1x128xf32> to vector<8x128xf32>
    %88 = arith.addf %86, %87 : vector<8x128xf32>
    %89 = math.tanh %88 : vector<8x128xf32>
    %90 = arith.negf %88 : vector<8x128xf32>
    %91 = math.exp %90 : vector<8x128xf32>
    %cst_24 = arith.constant 1.000000e+00 : f32
    %92 = vector.broadcast %cst_24 : f32 to vector<8x128xf32>
    %93 = arith.addf %92, %91 : vector<8x128xf32>
    %94 = arith.divf %92, %93 : vector<8x128xf32>
    %95 = arith.select %22, %89, %94 : vector<8x128xi1>, vector<8x128xf32>
    %96 = vector.extract_strided_slice %95 {offsets = [0, 0], sizes = [8, 32], strides = [1, 1]} : vector<8x128xf32> to vector<8x32xf32>
    %97 = vector.extract_strided_slice %95 {offsets = [0, 32], sizes = [8, 32], strides = [1, 1]} : vector<8x128xf32> to vector<8x32xf32>
    %98 = vector.extract_strided_slice %95 {offsets = [0, 64], sizes = [8, 32], strides = [1, 1]} : vector<8x128xf32> to vector<8x32xf32>
    %99 = vector.extract_strided_slice %95 {offsets = [0, 96], sizes = [8, 32], strides = [1, 1]} : vector<8x128xf32> to vector<8x32xf32>
    %100 = arith.mulf %97, %63 : vector<8x32xf32>
    %101 = arith.mulf %96, %98 : vector<8x32xf32>
    %102 = arith.addf %100, %101 : vector<8x32xf32>
    %103 = math.tanh %102 : vector<8x32xf32>
    %104 = arith.mulf %99, %103 : vector<8x32xf32>
    %105 = vector.extract_strided_slice %16 {offsets = [16, 0], sizes = [8, 128], strides = [1, 1]} : vector<64x128xf32> to vector<8x128xf32>
    %cst_25 = arith.constant dense<0.000000e+00> : vector<8x128xf32>
    %106 = tpu.matmul %84, %1, %cst_25 {dimension_numbers = #tpu.dot_dimension_numbers<[1], [0], [0], [1], [0, 0, 1, 1], [], []>} : vector<8x32xf32>, vector<32x128xf32>, vector<8x128xf32> -> vector<8x128xf32>
    %107 = arith.addf %105, %106 : vector<8x128xf32>
    %108 = math.tanh %107 : vector<8x128xf32>
    %109 = arith.negf %107 : vector<8x128xf32>
    %110 = math.exp %109 : vector<8x128xf32>
    %cst_26 = arith.constant 1.000000e+00 : f32
    %111 = vector.broadcast %cst_26 : f32 to vector<8x128xf32>
    %112 = arith.addf %111, %110 : vector<8x128xf32>
    %113 = arith.divf %111, %112 : vector<8x128xf32>
    %114 = arith.select %22, %108, %113 : vector<8x128xi1>, vector<8x128xf32>
    %115 = vector.extract_strided_slice %114 {offsets = [0, 0], sizes = [8, 32], strides = [1, 1]} : vector<8x128xf32> to vector<8x32xf32>
    %116 = vector.extract_strided_slice %114 {offsets = [0, 32], sizes = [8, 32], strides = [1, 1]} : vector<8x128xf32> to vector<8x32xf32>
    %117 = vector.extract_strided_slice %114 {offsets = [0, 64], sizes = [8, 32], strides = [1, 1]} : vector<8x128xf32> to vector<8x32xf32>
    %118 = vector.extract_strided_slice %114 {offsets = [0, 96], sizes = [8, 32], strides = [1, 1]} : vector<8x128xf32> to vector<8x32xf32>
    %119 = arith.mulf %116, %82 : vector<8x32xf32>
    %120 = arith.mulf %115, %117 : vector<8x32xf32>
    %121 = arith.addf %119, %120 : vector<8x32xf32>
    %122 = math.tanh %121 : vector<8x32xf32>
    %123 = arith.mulf %118, %122 : vector<8x32xf32>
    %124 = tpu.concatenate %123, %104 in 1 : vector<8x32xf32>, vector<8x32xf32> -> vector<8x64xf32>
    %cst_27 = arith.constant dense<0.000000e+00> : vector<8x128xf32>
    %125 = tpu.matmul %124, %2, %cst_27 {dimension_numbers = #tpu.dot_dimension_numbers<[1], [0], [0], [1], [0, 0, 1, 1], [], []>} : vector<8x64xf32>, vector<64x128xf32>, vector<8x128xf32> -> vector<8x128xf32>
    %126 = vector.broadcast %7 : vector<1x128xf32> to vector<8x128xf32>
    %127 = arith.addf %125, %126 : vector<8x128xf32>
    %128 = math.tanh %127 : vector<8x128xf32>
    %129 = arith.negf %127 : vector<8x128xf32>
    %130 = math.exp %129 : vector<8x128xf32>
    %cst_28 = arith.constant 1.000000e+00 : f32
    %131 = vector.broadcast %cst_28 : f32 to vector<8x128xf32>
    %132 = arith.addf %131, %130 : vector<8x128xf32>
    %133 = arith.divf %131, %132 : vector<8x128xf32>
    %134 = arith.select %22, %128, %133 : vector<8x128xi1>, vector<8x128xf32>
    %135 = vector.extract_strided_slice %134 {offsets = [0, 0], sizes = [8, 32], strides = [1, 1]} : vector<8x128xf32> to vector<8x32xf32>
    %136 = vector.extract_strided_slice %134 {offsets = [0, 32], sizes = [8, 32], strides = [1, 1]} : vector<8x128xf32> to vector<8x32xf32>
    %137 = vector.extract_strided_slice %134 {offsets = [0, 64], sizes = [8, 32], strides = [1, 1]} : vector<8x128xf32> to vector<8x32xf32>
    %138 = vector.extract_strided_slice %134 {offsets = [0, 96], sizes = [8, 32], strides = [1, 1]} : vector<8x128xf32> to vector<8x32xf32>
    %139 = arith.mulf %136, %102 : vector<8x32xf32>
    %140 = arith.mulf %135, %137 : vector<8x32xf32>
    %141 = arith.addf %139, %140 : vector<8x32xf32>
    %142 = math.tanh %141 : vector<8x32xf32>
    %143 = arith.mulf %138, %142 : vector<8x32xf32>
    %144 = vector.extract_strided_slice %16 {offsets = [24, 0], sizes = [8, 128], strides = [1, 1]} : vector<64x128xf32> to vector<8x128xf32>
    %cst_29 = arith.constant dense<0.000000e+00> : vector<8x128xf32>
    %145 = tpu.matmul %123, %1, %cst_29 {dimension_numbers = #tpu.dot_dimension_numbers<[1], [0], [0], [1], [0, 0, 1, 1], [], []>} : vector<8x32xf32>, vector<32x128xf32>, vector<8x128xf32> -> vector<8x128xf32>
    %146 = arith.addf %144, %145 : vector<8x128xf32>
    %147 = math.tanh %146 : vector<8x128xf32>
    %148 = arith.negf %146 : vector<8x128xf32>
    %149 = math.exp %148 : vector<8x128xf32>
    %cst_30 = arith.constant 1.000000e+00 : f32
    %150 = vector.broadcast %cst_30 : f32 to vector<8x128xf32>
    %151 = arith.addf %150, %149 : vector<8x128xf32>
    %152 = arith.divf %150, %151 : vector<8x128xf32>
    %153 = arith.select %22, %147, %152 : vector<8x128xi1>, vector<8x128xf32>
    %154 = vector.extract_strided_slice %153 {offsets = [0, 0], sizes = [8, 32], strides = [1, 1]} : vector<8x128xf32> to vector<8x32xf32>
    %155 = vector.extract_strided_slice %153 {offsets = [0, 32], sizes = [8, 32], strides = [1, 1]} : vector<8x128xf32> to vector<8x32xf32>
    %156 = vector.extract_strided_slice %153 {offsets = [0, 64], sizes = [8, 32], strides = [1, 1]} : vector<8x128xf32> to vector<8x32xf32>
    %157 = vector.extract_strided_slice %153 {offsets = [0, 96], sizes = [8, 32], strides = [1, 1]} : vector<8x128xf32> to vector<8x32xf32>
    %158 = arith.mulf %155, %121 : vector<8x32xf32>
    %159 = arith.mulf %154, %156 : vector<8x32xf32>
    %160 = arith.addf %158, %159 : vector<8x32xf32>
    %161 = math.tanh %160 : vector<8x32xf32>
    %162 = arith.mulf %157, %161 : vector<8x32xf32>
    %163 = tpu.concatenate %162, %143 in 1 : vector<8x32xf32>, vector<8x32xf32> -> vector<8x64xf32>
    %cst_31 = arith.constant dense<0.000000e+00> : vector<8x128xf32>
    %164 = tpu.matmul %163, %2, %cst_31 {dimension_numbers = #tpu.dot_dimension_numbers<[1], [0], [0], [1], [0, 0, 1, 1], [], []>} : vector<8x64xf32>, vector<64x128xf32>, vector<8x128xf32> -> vector<8x128xf32>
    %165 = vector.broadcast %7 : vector<1x128xf32> to vector<8x128xf32>
    %166 = arith.addf %164, %165 : vector<8x128xf32>
    %167 = math.tanh %166 : vector<8x128xf32>
    %168 = arith.negf %166 : vector<8x128xf32>
    %169 = math.exp %168 : vector<8x128xf32>
    %cst_32 = arith.constant 1.000000e+00 : f32
    %170 = vector.broadcast %cst_32 : f32 to vector<8x128xf32>
    %171 = arith.addf %170, %169 : vector<8x128xf32>
    %172 = arith.divf %170, %171 : vector<8x128xf32>
    %173 = arith.select %22, %167, %172 : vector<8x128xi1>, vector<8x128xf32>
    %174 = vector.extract_strided_slice %173 {offsets = [0, 0], sizes = [8, 32], strides = [1, 1]} : vector<8x128xf32> to vector<8x32xf32>
    %175 = vector.extract_strided_slice %173 {offsets = [0, 32], sizes = [8, 32], strides = [1, 1]} : vector<8x128xf32> to vector<8x32xf32>
    %176 = vector.extract_strided_slice %173 {offsets = [0, 64], sizes = [8, 32], strides = [1, 1]} : vector<8x128xf32> to vector<8x32xf32>
    %177 = vector.extract_strided_slice %173 {offsets = [0, 96], sizes = [8, 32], strides = [1, 1]} : vector<8x128xf32> to vector<8x32xf32>
    %178 = arith.mulf %175, %141 : vector<8x32xf32>
    %179 = arith.mulf %174, %176 : vector<8x32xf32>
    %180 = arith.addf %178, %179 : vector<8x32xf32>
    %181 = math.tanh %180 : vector<8x32xf32>
    %182 = arith.mulf %177, %181 : vector<8x32xf32>
    %183 = vector.extract_strided_slice %16 {offsets = [32, 0], sizes = [8, 128], strides = [1, 1]} : vector<64x128xf32> to vector<8x128xf32>
    %cst_33 = arith.constant dense<0.000000e+00> : vector<8x128xf32>
    %184 = tpu.matmul %162, %1, %cst_33 {dimension_numbers = #tpu.dot_dimension_numbers<[1], [0], [0], [1], [0, 0, 1, 1], [], []>} : vector<8x32xf32>, vector<32x128xf32>, vector<8x128xf32> -> vector<8x128xf32>
    %185 = arith.addf %183, %184 : vector<8x128xf32>
    %186 = math.tanh %185 : vector<8x128xf32>
    %187 = arith.negf %185 : vector<8x128xf32>
    %188 = math.exp %187 : vector<8x128xf32>
    %cst_34 = arith.constant 1.000000e+00 : f32
    %189 = vector.broadcast %cst_34 : f32 to vector<8x128xf32>
    %190 = arith.addf %189, %188 : vector<8x128xf32>
    %191 = arith.divf %189, %190 : vector<8x128xf32>
    %192 = arith.select %22, %186, %191 : vector<8x128xi1>, vector<8x128xf32>
    %193 = vector.extract_strided_slice %192 {offsets = [0, 0], sizes = [8, 32], strides = [1, 1]} : vector<8x128xf32> to vector<8x32xf32>
    %194 = vector.extract_strided_slice %192 {offsets = [0, 32], sizes = [8, 32], strides = [1, 1]} : vector<8x128xf32> to vector<8x32xf32>
    %195 = vector.extract_strided_slice %192 {offsets = [0, 64], sizes = [8, 32], strides = [1, 1]} : vector<8x128xf32> to vector<8x32xf32>
    %196 = vector.extract_strided_slice %192 {offsets = [0, 96], sizes = [8, 32], strides = [1, 1]} : vector<8x128xf32> to vector<8x32xf32>
    %197 = arith.mulf %194, %160 : vector<8x32xf32>
    %198 = arith.mulf %193, %195 : vector<8x32xf32>
    %199 = arith.addf %197, %198 : vector<8x32xf32>
    %200 = math.tanh %199 : vector<8x32xf32>
    %201 = arith.mulf %196, %200 : vector<8x32xf32>
    %202 = tpu.concatenate %201, %182 in 1 : vector<8x32xf32>, vector<8x32xf32> -> vector<8x64xf32>
    %cst_35 = arith.constant dense<0.000000e+00> : vector<8x128xf32>
    %203 = tpu.matmul %202, %2, %cst_35 {dimension_numbers = #tpu.dot_dimension_numbers<[1], [0], [0], [1], [0, 0, 1, 1], [], []>} : vector<8x64xf32>, vector<64x128xf32>, vector<8x128xf32> -> vector<8x128xf32>
    %204 = vector.broadcast %7 : vector<1x128xf32> to vector<8x128xf32>
    %205 = arith.addf %203, %204 : vector<8x128xf32>
    %206 = math.tanh %205 : vector<8x128xf32>
    %207 = arith.negf %205 : vector<8x128xf32>
    %208 = math.exp %207 : vector<8x128xf32>
    %cst_36 = arith.constant 1.000000e+00 : f32
    %209 = vector.broadcast %cst_36 : f32 to vector<8x128xf32>
    %210 = arith.addf %209, %208 : vector<8x128xf32>
    %211 = arith.divf %209, %210 : vector<8x128xf32>
    %212 = arith.select %22, %206, %211 : vector<8x128xi1>, vector<8x128xf32>
    %213 = vector.extract_strided_slice %212 {offsets = [0, 0], sizes = [8, 32], strides = [1, 1]} : vector<8x128xf32> to vector<8x32xf32>
    %214 = vector.extract_strided_slice %212 {offsets = [0, 32], sizes = [8, 32], strides = [1, 1]} : vector<8x128xf32> to vector<8x32xf32>
    %215 = vector.extract_strided_slice %212 {offsets = [0, 64], sizes = [8, 32], strides = [1, 1]} : vector<8x128xf32> to vector<8x32xf32>
    %216 = vector.extract_strided_slice %212 {offsets = [0, 96], sizes = [8, 32], strides = [1, 1]} : vector<8x128xf32> to vector<8x32xf32>
    %217 = arith.mulf %214, %180 : vector<8x32xf32>
    %218 = arith.mulf %213, %215 : vector<8x32xf32>
    %219 = arith.addf %217, %218 : vector<8x32xf32>
    %220 = math.tanh %219 : vector<8x32xf32>
    %221 = arith.mulf %216, %220 : vector<8x32xf32>
    %222 = vector.extract_strided_slice %16 {offsets = [40, 0], sizes = [8, 128], strides = [1, 1]} : vector<64x128xf32> to vector<8x128xf32>
    %cst_37 = arith.constant dense<0.000000e+00> : vector<8x128xf32>
    %223 = tpu.matmul %201, %1, %cst_37 {dimension_numbers = #tpu.dot_dimension_numbers<[1], [0], [0], [1], [0, 0, 1, 1], [], []>} : vector<8x32xf32>, vector<32x128xf32>, vector<8x128xf32> -> vector<8x128xf32>
    %224 = arith.addf %222, %223 : vector<8x128xf32>
    %225 = math.tanh %224 : vector<8x128xf32>
    %226 = arith.negf %224 : vector<8x128xf32>
    %227 = math.exp %226 : vector<8x128xf32>
    %cst_38 = arith.constant 1.000000e+00 : f32
    %228 = vector.broadcast %cst_38 : f32 to vector<8x128xf32>
    %229 = arith.addf %228, %227 : vector<8x128xf32>
    %230 = arith.divf %228, %229 : vector<8x128xf32>
    %231 = arith.select %22, %225, %230 : vector<8x128xi1>, vector<8x128xf32>
    %232 = vector.extract_strided_slice %231 {offsets = [0, 0], sizes = [8, 32], strides = [1, 1]} : vector<8x128xf32> to vector<8x32xf32>
    %233 = vector.extract_strided_slice %231 {offsets = [0, 32], sizes = [8, 32], strides = [1, 1]} : vector<8x128xf32> to vector<8x32xf32>
    %234 = vector.extract_strided_slice %231 {offsets = [0, 64], sizes = [8, 32], strides = [1, 1]} : vector<8x128xf32> to vector<8x32xf32>
    %235 = vector.extract_strided_slice %231 {offsets = [0, 96], sizes = [8, 32], strides = [1, 1]} : vector<8x128xf32> to vector<8x32xf32>
    %236 = arith.mulf %233, %199 : vector<8x32xf32>
    %237 = arith.mulf %232, %234 : vector<8x32xf32>
    %238 = arith.addf %236, %237 : vector<8x32xf32>
    %239 = math.tanh %238 : vector<8x32xf32>
    %240 = arith.mulf %235, %239 : vector<8x32xf32>
    %241 = tpu.concatenate %240, %221 in 1 : vector<8x32xf32>, vector<8x32xf32> -> vector<8x64xf32>
    %cst_39 = arith.constant dense<0.000000e+00> : vector<8x128xf32>
    %242 = tpu.matmul %241, %2, %cst_39 {dimension_numbers = #tpu.dot_dimension_numbers<[1], [0], [0], [1], [0, 0, 1, 1], [], []>} : vector<8x64xf32>, vector<64x128xf32>, vector<8x128xf32> -> vector<8x128xf32>
    %243 = vector.broadcast %7 : vector<1x128xf32> to vector<8x128xf32>
    %244 = arith.addf %242, %243 : vector<8x128xf32>
    %245 = math.tanh %244 : vector<8x128xf32>
    %246 = arith.negf %244 : vector<8x128xf32>
    %247 = math.exp %246 : vector<8x128xf32>
    %cst_40 = arith.constant 1.000000e+00 : f32
    %248 = vector.broadcast %cst_40 : f32 to vector<8x128xf32>
    %249 = arith.addf %248, %247 : vector<8x128xf32>
    %250 = arith.divf %248, %249 : vector<8x128xf32>
    %251 = arith.select %22, %245, %250 : vector<8x128xi1>, vector<8x128xf32>
    %252 = vector.extract_strided_slice %251 {offsets = [0, 0], sizes = [8, 32], strides = [1, 1]} : vector<8x128xf32> to vector<8x32xf32>
    %253 = vector.extract_strided_slice %251 {offsets = [0, 32], sizes = [8, 32], strides = [1, 1]} : vector<8x128xf32> to vector<8x32xf32>
    %254 = vector.extract_strided_slice %251 {offsets = [0, 64], sizes = [8, 32], strides = [1, 1]} : vector<8x128xf32> to vector<8x32xf32>
    %255 = vector.extract_strided_slice %251 {offsets = [0, 96], sizes = [8, 32], strides = [1, 1]} : vector<8x128xf32> to vector<8x32xf32>
    %256 = arith.mulf %253, %219 : vector<8x32xf32>
    %257 = arith.mulf %252, %254 : vector<8x32xf32>
    %258 = arith.addf %256, %257 : vector<8x32xf32>
    %259 = math.tanh %258 : vector<8x32xf32>
    %260 = arith.mulf %255, %259 : vector<8x32xf32>
    %261 = vector.extract_strided_slice %16 {offsets = [48, 0], sizes = [8, 128], strides = [1, 1]} : vector<64x128xf32> to vector<8x128xf32>
    %cst_41 = arith.constant dense<0.000000e+00> : vector<8x128xf32>
    %262 = tpu.matmul %240, %1, %cst_41 {dimension_numbers = #tpu.dot_dimension_numbers<[1], [0], [0], [1], [0, 0, 1, 1], [], []>} : vector<8x32xf32>, vector<32x128xf32>, vector<8x128xf32> -> vector<8x128xf32>
    %263 = arith.addf %261, %262 : vector<8x128xf32>
    %264 = math.tanh %263 : vector<8x128xf32>
    %265 = arith.negf %263 : vector<8x128xf32>
    %266 = math.exp %265 : vector<8x128xf32>
    %cst_42 = arith.constant 1.000000e+00 : f32
    %267 = vector.broadcast %cst_42 : f32 to vector<8x128xf32>
    %268 = arith.addf %267, %266 : vector<8x128xf32>
    %269 = arith.divf %267, %268 : vector<8x128xf32>
    %270 = arith.select %22, %264, %269 : vector<8x128xi1>, vector<8x128xf32>
    %271 = vector.extract_strided_slice %270 {offsets = [0, 0], sizes = [8, 32], strides = [1, 1]} : vector<8x128xf32> to vector<8x32xf32>
    %272 = vector.extract_strided_slice %270 {offsets = [0, 32], sizes = [8, 32], strides = [1, 1]} : vector<8x128xf32> to vector<8x32xf32>
    %273 = vector.extract_strided_slice %270 {offsets = [0, 64], sizes = [8, 32], strides = [1, 1]} : vector<8x128xf32> to vector<8x32xf32>
    %274 = vector.extract_strided_slice %270 {offsets = [0, 96], sizes = [8, 32], strides = [1, 1]} : vector<8x128xf32> to vector<8x32xf32>
    %275 = arith.mulf %272, %238 : vector<8x32xf32>
    %276 = arith.mulf %271, %273 : vector<8x32xf32>
    %277 = arith.addf %275, %276 : vector<8x32xf32>
    %278 = math.tanh %277 : vector<8x32xf32>
    %279 = arith.mulf %274, %278 : vector<8x32xf32>
    %280 = tpu.concatenate %279, %260 in 1 : vector<8x32xf32>, vector<8x32xf32> -> vector<8x64xf32>
    %cst_43 = arith.constant dense<0.000000e+00> : vector<8x128xf32>
    %281 = tpu.matmul %280, %2, %cst_43 {dimension_numbers = #tpu.dot_dimension_numbers<[1], [0], [0], [1], [0, 0, 1, 1], [], []>} : vector<8x64xf32>, vector<64x128xf32>, vector<8x128xf32> -> vector<8x128xf32>
    %282 = vector.broadcast %7 : vector<1x128xf32> to vector<8x128xf32>
    %283 = arith.addf %281, %282 : vector<8x128xf32>
    %284 = math.tanh %283 : vector<8x128xf32>
    %285 = arith.negf %283 : vector<8x128xf32>
    %286 = math.exp %285 : vector<8x128xf32>
    %cst_44 = arith.constant 1.000000e+00 : f32
    %287 = vector.broadcast %cst_44 : f32 to vector<8x128xf32>
    %288 = arith.addf %287, %286 : vector<8x128xf32>
    %289 = arith.divf %287, %288 : vector<8x128xf32>
    %290 = arith.select %22, %284, %289 : vector<8x128xi1>, vector<8x128xf32>
    %291 = vector.extract_strided_slice %290 {offsets = [0, 0], sizes = [8, 32], strides = [1, 1]} : vector<8x128xf32> to vector<8x32xf32>
    %292 = vector.extract_strided_slice %290 {offsets = [0, 32], sizes = [8, 32], strides = [1, 1]} : vector<8x128xf32> to vector<8x32xf32>
    %293 = vector.extract_strided_slice %290 {offsets = [0, 64], sizes = [8, 32], strides = [1, 1]} : vector<8x128xf32> to vector<8x32xf32>
    %294 = vector.extract_strided_slice %290 {offsets = [0, 96], sizes = [8, 32], strides = [1, 1]} : vector<8x128xf32> to vector<8x32xf32>
    %295 = arith.mulf %292, %258 : vector<8x32xf32>
    %296 = arith.mulf %291, %293 : vector<8x32xf32>
    %297 = arith.addf %295, %296 : vector<8x32xf32>
    %298 = math.tanh %297 : vector<8x32xf32>
    %299 = arith.mulf %294, %298 : vector<8x32xf32>
    %300 = vector.extract_strided_slice %16 {offsets = [56, 0], sizes = [8, 128], strides = [1, 1]} : vector<64x128xf32> to vector<8x128xf32>
    %cst_45 = arith.constant dense<0.000000e+00> : vector<8x128xf32>
    %301 = tpu.matmul %279, %1, %cst_45 {dimension_numbers = #tpu.dot_dimension_numbers<[1], [0], [0], [1], [0, 0, 1, 1], [], []>} : vector<8x32xf32>, vector<32x128xf32>, vector<8x128xf32> -> vector<8x128xf32>
    %302 = arith.addf %300, %301 : vector<8x128xf32>
    %303 = math.tanh %302 : vector<8x128xf32>
    %304 = arith.negf %302 : vector<8x128xf32>
    %305 = math.exp %304 : vector<8x128xf32>
    %cst_46 = arith.constant 1.000000e+00 : f32
    %306 = vector.broadcast %cst_46 : f32 to vector<8x128xf32>
    %307 = arith.addf %306, %305 : vector<8x128xf32>
    %308 = arith.divf %306, %307 : vector<8x128xf32>
    %309 = arith.select %22, %303, %308 : vector<8x128xi1>, vector<8x128xf32>
    %310 = vector.extract_strided_slice %309 {offsets = [0, 0], sizes = [8, 32], strides = [1, 1]} : vector<8x128xf32> to vector<8x32xf32>
    %311 = vector.extract_strided_slice %309 {offsets = [0, 32], sizes = [8, 32], strides = [1, 1]} : vector<8x128xf32> to vector<8x32xf32>
    %312 = vector.extract_strided_slice %309 {offsets = [0, 64], sizes = [8, 32], strides = [1, 1]} : vector<8x128xf32> to vector<8x32xf32>
    %313 = vector.extract_strided_slice %309 {offsets = [0, 96], sizes = [8, 32], strides = [1, 1]} : vector<8x128xf32> to vector<8x32xf32>
    %314 = arith.mulf %311, %277 : vector<8x32xf32>
    %315 = arith.mulf %310, %312 : vector<8x32xf32>
    %316 = arith.addf %314, %315 : vector<8x32xf32>
    %317 = math.tanh %316 : vector<8x32xf32>
    %318 = arith.mulf %313, %317 : vector<8x32xf32>
    %319 = tpu.concatenate %318, %299 in 1 : vector<8x32xf32>, vector<8x32xf32> -> vector<8x64xf32>
    %cst_47 = arith.constant dense<0.000000e+00> : vector<8x128xf32>
    %320 = tpu.matmul %319, %2, %cst_47 {dimension_numbers = #tpu.dot_dimension_numbers<[1], [0], [0], [1], [0, 0, 1, 1], [], []>} : vector<8x64xf32>, vector<64x128xf32>, vector<8x128xf32> -> vector<8x128xf32>
    %321 = vector.broadcast %7 : vector<1x128xf32> to vector<8x128xf32>
    %322 = arith.addf %320, %321 : vector<8x128xf32>
    %323 = math.tanh %322 : vector<8x128xf32>
    %324 = arith.negf %322 : vector<8x128xf32>
    %325 = math.exp %324 : vector<8x128xf32>
    %cst_48 = arith.constant 1.000000e+00 : f32
    %326 = vector.broadcast %cst_48 : f32 to vector<8x128xf32>
    %327 = arith.addf %326, %325 : vector<8x128xf32>
    %328 = arith.divf %326, %327 : vector<8x128xf32>
    %329 = arith.select %22, %323, %328 : vector<8x128xi1>, vector<8x128xf32>
    %330 = vector.extract_strided_slice %329 {offsets = [0, 0], sizes = [8, 32], strides = [1, 1]} : vector<8x128xf32> to vector<8x32xf32>
    %331 = vector.extract_strided_slice %329 {offsets = [0, 32], sizes = [8, 32], strides = [1, 1]} : vector<8x128xf32> to vector<8x32xf32>
    %332 = vector.extract_strided_slice %329 {offsets = [0, 64], sizes = [8, 32], strides = [1, 1]} : vector<8x128xf32> to vector<8x32xf32>
    %333 = vector.extract_strided_slice %329 {offsets = [0, 96], sizes = [8, 32], strides = [1, 1]} : vector<8x128xf32> to vector<8x32xf32>
    %334 = arith.mulf %331, %297 : vector<8x32xf32>
    %335 = arith.mulf %330, %332 : vector<8x32xf32>
    %336 = arith.addf %334, %335 : vector<8x32xf32>
    %337 = math.tanh %336 : vector<8x32xf32>
    %338 = arith.mulf %333, %337 : vector<8x32xf32>
    %339 = tpu.concatenate %318, %338 in 1 : vector<8x32xf32>, vector<8x32xf32> -> vector<8x64xf32>
    %cst_49 = arith.constant dense<0.000000e+00> : vector<8x128xf32>
    %340 = tpu.matmul %12, %4, %cst_49 {dimension_numbers = #tpu.dot_dimension_numbers<[1], [0], [0], [1], [0, 0, 1, 1], [], []>} : vector<8x64xf32>, vector<64x128xf32>, vector<8x128xf32> -> vector<8x128xf32>
    %cst_50 = arith.constant dense<0.000000e+00> : vector<8x128xf32>
    %341 = tpu.matmul %339, %3, %cst_50 {dimension_numbers = #tpu.dot_dimension_numbers<[1], [0], [0], [1], [0, 0, 1, 1], [], []>} : vector<8x64xf32>, vector<64x128xf32>, vector<8x128xf32> -> vector<8x128xf32>
    %342 = arith.addf %340, %341 : vector<8x128xf32>
    %343 = vector.broadcast %8 : vector<1x128xf32> to vector<8x128xf32>
    %344 = arith.addf %342, %343 : vector<8x128xf32>
    %c0_51 = arith.constant 0 : index
    %c0_52 = arith.constant 0 : index
    %345 = vector.load %arg4[%c0_51, %c0_52] : memref<8x128xf32, #tpu.memory_space<vmem>>, vector<8x128xf32>
    tpu.vector_store %arg4[%c0_51, %c0_52], %344 {strides = array<i32>} : memref<8x128xf32, #tpu.memory_space<vmem>>, vector<8x128xf32>,
    return
  }
}

</mosaic_0001>

<bundles_post_ra>
// kernel: run_model.1
= control target key start
LH: loop header
LB: loop body
LE: loop exit
PB: predicated region body
PF: predicated region fallthrough
CT: control target
= control target key end

     0   :  { %vm377_vm0 = vcmask 261120   ;;  %s1966_s11 = smov 64   ;;  %s1967_s12 = smov 32   ;;  %vm516_vm8 = vcmask 523264   ;;  %s2626_s2 = inlined_call_operand.vmem [shape: bf16[768,64], index: 2, kind: input, shape index: {}]   ;;  %s2627_s0 = inlined_call_operand.vmem [shape: f32[8,768], index: 0, kind: input, shape index: {}]   ;;  %s2628_s3 = inlined_call_operand.vmem [shape: f32[264,128], index: 3, kind: input, shape index: {}]   ;;  %s2629_s1 = inlined_call_operand.vmem [shape: f32[64,32], index: 1, kind: input, shape index: {}]   ;;  %s2630_s4 = inlined_call_operand.vmem [shape: f32[8,128], index: 4, kind: output, shape index: {}]  }
   0x1   :  { %v1792_v0 = vld [vmem:[%s2626_s2 + $0x38] sm:$0xff]   ;;  %v1791_v8 = vld [vmem:[%s2626_s2 + $0x30] sm:$0xff]   ;;  %v1790_v20 = vld [vmem:[%s2626_s2 + $0x28] sm:$0xff]  }
   0x2   :  { %v1808_v1 = vld [vmem:[%s2626_s2 + $0xb8] sm:$0xff]   ;;  %v1625_v3 = vunpack.c.h.bf16 %v1792_v0  ;;  %v1624_v5 = vunpack.c.l.bf16 %v1792_v0  ;;  %v1807_v9 = vld [vmem:[%s2626_s2 + $0xb0] sm:$0xff]   ;;  %v1621_v15 = vunpack.c.h.bf16 %v1791_v8  ;;  %v1806_v21 = vld [vmem:[%s2626_s2 + $0xa8] sm:$0xff]   ;;  %v1620_v22 = vunpack.c.l.bf16 %v1791_v8 }
   0x3   :  { %v1800_v2 = vld [vmem:[%s2626_s2 + $0x78] sm:$0xff]   ;;  %v1689_v4 = vunpack.c.h.bf16 %v1808_v1  ;;  %v1688_v10 = vunpack.c.l.bf16 %v1808_v1  ;;  %v1799_v13 = vld [vmem:[%s2626_s2 + $0x70] sm:$0xff]   ;;  %v1685_v16 = vunpack.c.h.bf16 %v1807_v9  ;;  %v1684_v23 = vunpack.c.l.bf16 %v1807_v9  ;;  %v1798_v24 = vld [vmem:[%s2626_s2 + $0x68] sm:$0xff]  }
   0x4   :  { %v1657_v6 = vunpack.c.h.bf16 %v1800_v2  ;;  %v1816_v7 = vld [vmem:[%s2626_s2 + $0xf8] sm:$0xff]   ;;  %v1656_v12 = vunpack.c.l.bf16 %v1800_v2  ;;  %v1815_v14 = vld [vmem:[%s2626_s2 + $0xf0] sm:$0xff]   ;;  %248 = vmatpush.msra.mxu0 %v1625_v3  ;;  %v1653_v18 = vunpack.c.h.bf16 %v1799_v13  ;;  %v1814_v25 = vld [vmem:[%s2626_s2 + $0xe8] sm:$0xff]   ;;  %v1652_v26 = vunpack.c.l.bf16 %v1799_v13 }
   0x5   :  { %v1721_v11 = vunpack.c.h.bf16 %v1816_v7  ;;  %288 = vmatpush.msra.mxu2 %v1689_v4  ;;  %v1720_v17 = vunpack.c.l.bf16 %v1816_v7  ;;  %v1717_v19 = vunpack.c.h.bf16 %v1815_v14  ;;  %v1716_v27 = vunpack.c.l.bf16 %v1815_v14  ;;  %v1789_v32 = vld [vmem:[%s2626_s2 + $0x20] sm:$0xff]   ;;  %v1788_v44 = vld [vmem:[%s2626_s2 + $0x18] sm:$0xff]   ;;  %v1787_v56 = vld [vmem:[%s2626_s2 + $0x10] sm:$0xff]  }
   0x6   :  { %268 = vmatpush.msra.mxu1 %v1657_v6  ;;  %249 = vmatpush.msra.mxu0 %v1624_v5  ;;  %v1617_v28 = vunpack.c.h.bf16 %v1790_v20  ;;  %v1681_v29 = vunpack.c.h.bf16 %v1806_v21  ;;  %v1649_v30 = vunpack.c.h.bf16 %v1798_v24  ;;  %v1713_v31 = vunpack.c.h.bf16 %v1814_v25  ;;  %v1805_v33 = vld [vmem:[%s2626_s2 + $0xa0] sm:$0xff]   ;;  %v1804_v45 = vld [vmem:[%s2626_s2 + $0x98] sm:$0xff]   ;;  %v1803_v57 = vld [vmem:[%s2626_s2 + $0x90] sm:$0xff]  }
   0x7   :  { %308 = vmatpush.msra.mxu3 %v1721_v11  ;;  %289 = vmatpush.msra.mxu2 %v1688_v10  ;;  %v1616_v34 = vunpack.c.l.bf16 %v1790_v20  ;;  %v1680_v35 = vunpack.c.l.bf16 %v1806_v21  ;;  %v1797_v36 = vld [vmem:[%s2626_s2 + $0x60] sm:$0xff]   ;;  %v1648_v38 = vunpack.c.l.bf16 %v1798_v24  ;;  %v1712_v39 = vunpack.c.l.bf16 %v1814_v25  ;;  %v1796_v48 = vld [vmem:[%s2626_s2 + $0x58] sm:$0xff]   ;;  %v1795_v60 = vld [vmem:[%s2626_s2 + $0x50] sm:$0xff]  }
   0x8   :  { %269 = vmatpush.msra.mxu1 %v1656_v12  ;;  %250 = vmatpush.msra.mxu0 %v1621_v15  ;;  %v1813_v37 = vld [vmem:[%s2626_s2 + $0xe0] sm:$0xff]   ;;  %v1613_v40 = vunpack.c.h.bf16 %v1789_v32  ;;  %v1677_v41 = vunpack.c.h.bf16 %v1805_v33  ;;  %v1645_v42 = vunpack.c.h.bf16 %v1797_v36  ;;  %v1612_v46 = vunpack.c.l.bf16 %v1789_v32  ;;  %v1812_v49 = vld [vmem:[%s2626_s2 + $0xd8] sm:$0xff]   ;;  %v1811_v61 = vld [vmem:[%s2626_s2 + $0xd0] sm:$0xff]  }
   0x9   :  { %309 = vmatpush.msra.mxu3 %v1720_v17  ;;  %290 = vmatpush.msra.mxu2 %v1685_v16  ;;  %v1709_v43 = vunpack.c.h.bf16 %v1813_v37  ;;  %v1676_v47 = vunpack.c.l.bf16 %v1805_v33  ;;  %v1644_v50 = vunpack.c.l.bf16 %v1797_v36  ;;  %v1708_v51 = vunpack.c.l.bf16 %v1813_v37  ;;  %v1786_v4 = vld [vmem:[%s2626_s2 + $0x8] sm:$0xff]   ;;  %v1595_v16 = vld [vmem:[%s2626_s2] sm:$0xff]   ;;  %v1832_v32 = vld [vmem:[%s2626_s2 + $0x178] sm:$0xff]  }
   0xa   :  { %270 = vmatpush.msra.mxu1 %v1653_v18  ;;  %251 = vmatpush.msra.mxu0 %v1620_v22  ;;  %v1609_v52 = vunpack.c.h.bf16 %v1788_v44  ;;  %v1673_v53 = vunpack.c.h.bf16 %v1804_v45  ;;  %v1641_v54 = vunpack.c.h.bf16 %v1796_v48  ;;  %v1705_v55 = vunpack.c.h.bf16 %v1812_v49  ;;  %v1802_v5 = vld [vmem:[%s2626_s2 + $0x88] sm:$0xff]   ;;  %v1801_v17 = vld [vmem:[%s2626_s2 + $0x80] sm:$0xff]   ;;  %v52_v33 = vld [vmem:[%s2627_s0 + $0x10] sm:$0xff] }
   0xb   :  { %310 = vmatpush.msra.mxu3 %v1717_v19  ;;  %291 = vmatpush.msra.mxu2 %v1684_v23  ;;  %v1608_v58 = vunpack.c.l.bf16 %v1788_v44  ;;  %v1672_v59 = vunpack.c.l.bf16 %v1804_v45  ;;  %v1640_v62 = vunpack.c.l.bf16 %v1796_v48  ;;  %v1704_v63 = vunpack.c.l.bf16 %v1812_v49  ;;  %v1794_v8 = vld [vmem:[%s2626_s2 + $0x48] sm:$0xff]   ;;  %v1793_v20 = vld [vmem:[%s2626_s2 + $0x40] sm:$0xff]  }
   0xc   :  { %271 = vmatpush.msra.mxu1 %v1652_v26  ;;  %252 = vmatpush.msra.mxu0 %v1617_v28  ;;  %v1605_v0 = vunpack.c.h.bf16 %v1787_v56  ;;  %v1669_v1 = vunpack.c.h.bf16 %v1803_v57  ;;  %v1637_v2 = vunpack.c.h.bf16 %v1795_v60  ;;  %v1701_v3 = vunpack.c.h.bf16 %v1811_v61  ;;  %v1810_v9 = vld [vmem:[%s2626_s2 + $0xc8] sm:$0xff]   ;;  %v1809_v21 = vld [vmem:[%s2626_s2 + $0xc0] sm:$0xff]   ;;  %v1824_v26 = vld [vmem:[%s2626_s2 + $0x138] sm:$0xff]  }
   0xd   :  { %311 = vmatpush.msra.mxu3 %v1716_v27  ;;  %292 = vmatpush.msra.mxu2 %v1681_v29  ;;  %v1604_v6 = vunpack.c.l.bf16 %v1787_v56  ;;  %v1668_v7 = vunpack.c.l.bf16 %v1803_v57  ;;  %v1636_v10 = vunpack.c.l.bf16 %v1795_v60  ;;  %v1700_v11 = vunpack.c.l.bf16 %v1811_v61  ;;  %v50_v44 = vld [vmem:[%s2627_s0] sm:$0xff]  ;;  %v51_v45 = vld [vmem:[%s2627_s0 + $0x8] sm:$0xff] }
   0xe   :  { %272 = vmatpush.msra.mxu1 %v1649_v30  ;;  %253 = vmatpush.msra.mxu0 %v1616_v34  ;;  %v1601_v12 = vunpack.c.h.bf16 %v1786_v4  ;;  %v1665_v13 = vunpack.c.h.bf16 %v1802_v5  ;;  %v1633_v14 = vunpack.c.h.bf16 %v1794_v8  ;;  %v1697_v15 = vunpack.c.h.bf16 %v1810_v9  ;;  %v1822_v48 = vld [vmem:[%s2626_s2 + $0x128] sm:$0xff]   ;;  %v2157_v60 = vld [vmem:[%s2628_s3 + $0x20] sm:$0xff] }
   0xf   :  { %312 = vmatpush.msra.mxu3 %v1713_v31  ;;  %293 = vmatpush.msra.mxu2 %v1680_v35  ;;  %v1600_v18 = vunpack.c.l.bf16 %v1786_v4  ;;  %v1664_v19 = vunpack.c.l.bf16 %v1802_v5  ;;  %v1632_v22 = vunpack.c.l.bf16 %v1794_v8  ;;  %v1696_v23 = vunpack.c.l.bf16 %v1810_v9  ;;  %v20_v35 = vld [vmem:[%s2628_s3 + $0x18] sm:$0xff]  ;;  %v18_v49 = vld [vmem:[%s2628_s3 + $0x8] sm:$0xff]  ;;  %v1819_v9 = vld [vmem:[%s2626_s2 + $0x110] sm:$0xff]  }
  0x10   :  { %273 = vmatpush.msra.mxu1 %v1648_v38  ;;  %254 = vmatpush.msra.mxu0 %v1613_v40  ;;  %v1597_v24 = vunpack.c.h.bf16 %v1595_v16  ;;  %v1661_v25 = vunpack.c.h.bf16 %v1801_v17  ;;  %v1629_v27 = vunpack.c.h.bf16 %v1793_v20  ;;  %v1693_v28 = vunpack.c.h.bf16 %v1809_v21  ;;  %v53_v40 = vld [vmem:[%s2627_s0 + $0x18] sm:$0xff] }
  0x11   :  { %313 = vmatpush.msra.mxu3 %v1712_v39  ;;  %294 = vmatpush.msra.mxu2 %v1677_v41  ;;  %v1596_v29 = vunpack.c.l.bf16 %v1595_v16  ;;  %v1660_v30 = vunpack.c.l.bf16 %v1801_v17  ;;  %v1753_v31 = vunpack.c.h.bf16 %v1824_v26  ;;  %v1628_v34 = vunpack.c.l.bf16 %v1793_v20  ;;  %v1823_v39 = vld [vmem:[%s2626_s2 + $0x130] sm:$0xff]  }
  0x12   :  { %274 = vmatpush.msra.mxu1 %v1645_v42  ;;  %255 = vmatpush.msra.mxu0 %v1612_v46  ;;  %v1692_v36 = vunpack.c.l.bf16 %v1809_v21  ;;  %v1752_v37 = vunpack.c.l.bf16 %v1824_v26  ;;  %v1785_v38 = vunpack.c.h.bf16 %v1832_v32  ;;  %v19_v41 = vld [vmem:[%s2628_s3 + $0x10] sm:$0xff]  ;;  %v2113_v42 = vld [vmem:[%s2628_s3 + $0x38] sm:$0xff]  ;;  %v1749_v46 = vunpack.c.h.bf16 %v1823_v39  ;;  %v1817_v21 = vld [vmem:[%s2626_s2 + $0x100] sm:$0xff]  }
  0x13   :  { %314 = vmatpush.msra.mxu3 %v1709_v43  ;;  %295 = vmatpush.msra.mxu2 %v1676_v47  ;;  %v1831_v43 = vld [vmem:[%s2626_s2 + $0x170] sm:$0xff]   ;;  %v1784_v47 = vunpack.c.l.bf16 %v1832_v32  ;;  %v1745_v56 = vunpack.c.h.bf16 %v1822_v48  ;;  %v1744_v61 = vunpack.c.l.bf16 %v1822_v48  ;;  %v1965_v5 = vmov 0.0  }
  0x14   :  { %275 = vmatpush.msra.mxu1 %v1644_v50  ;;  %256 = vmatpush.msra.mxu0 %v1609_v52  ;;  %v2134_v50 = vld [vmem:[%s2628_s3 + $0x30] sm:$0xff]  ;;  %v1781_v52 = vunpack.c.h.bf16 %v1831_v43  ;;  %v1780_v57 = vunpack.c.l.bf16 %v1831_v43  ;;  %v1732_v16 = vunpack.c.l.bf16 %v1819_v9 }
  0x15   :  { %315 = vmatpush.msra.mxu3 %v1708_v51  ;;  %296 = vmatpush.msra.mxu2 %v1673_v53  ;;  %v1748_v51 = vunpack.c.l.bf16 %v1823_v39  ;;  %v1830_v53 = vld [vmem:[%s2626_s2 + $0x168] sm:$0xff]   ;;  %v2208_v39 = vld [vmem:[%s2628_s3 + $0x100] sm:$0xff] }
  0x16   :  { %276 = vmatpush.msra.mxu1 %v1641_v54  ;;  %257 = vmatpush.msra.mxu0 %v1608_v58  ;;  %v17_v54 = vld [vmem:[%s2628_s3] sm:$0xff] }
  0x17   :  { %316 = vmatpush.msra.mxu3 %v1705_v55  ;;  %297 = vmatpush.msra.mxu2 %v1672_v59  ;;  %v2145_v55 = vld [vmem:[%s2628_s3 + $0x28] sm:$0xff]  ;;  %v1821_v58 = vld [vmem:[%s2626_s2 + $0x120] sm:$0xff]  }
  0x18   :  { %277 = vmatpush.msra.mxu1 %v1640_v62  ;;  %258 = vmatpush.msra.mxu0 %v1605_v0  ;;  %v368_v59 = vld [vmem:[%s2629_s1] sm:$0xff]  ;;  %v1777_v62 = vunpack.c.h.bf16 %v1830_v53  ;;  %v1741_v0 = vunpack.c.h.bf16 %v1821_v58 }
  0x19   :  { %317 = vmatpush.msra.mxu3 %v1704_v63  ;;  %298 = vmatpush.msra.mxu2 %v1669_v1  ;;  %v1829_v63 = vld [vmem:[%s2626_s2 + $0x160] sm:$0xff]   ;;  %v1776_v1 = vunpack.c.l.bf16 %v1830_v53 }
  0x1a   :  { %278 = vmatpush.msra.mxu1 %v1637_v2  ;;  %259 = vmatpush.msra.mxu0 %v1604_v6  ;;  %v1820_v2 = vld [vmem:[%s2626_s2 + $0x118] sm:$0xff]   ;;  %v1773_v4 = vunpack.c.h.bf16 %v1829_v63  ;;  %v1772_v8 = vunpack.c.l.bf16 %v1829_v63 }
  0x1b   :  { %318 = vmatpush.msra.mxu3 %v1701_v3  ;;  %299 = vmatpush.msra.mxu2 %v1668_v7  ;;  %v1740_v3 = vunpack.c.l.bf16 %v1821_v58  ;;  %v1828_v6 = vld [vmem:[%s2626_s2 + $0x158] sm:$0xff]   ;;  %v1737_v7 = vunpack.c.h.bf16 %v1820_v2 }
  0x1c   :  { %279 = vmatpush.msra.mxu1 %v1636_v10  ;;  %260 = vmatpush.msra.mxu0 %v1601_v12  ;;  %v1736_v10 = vunpack.c.l.bf16 %v1820_v2  ;;  %v1827_v12 = vld [vmem:[%s2626_s2 + $0x150] sm:$0xff]  }
  0x1d   :  { %319 = vmatpush.msra.mxu3 %v1700_v11  ;;  %300 = vmatpush.msra.mxu2 %v1665_v13  ;;  %v1769_v11 = vunpack.c.h.bf16 %v1828_v6  ;;  %v1733_v13 = vunpack.c.h.bf16 %v1819_v9  ;;  %v1765_v17 = vunpack.c.h.bf16 %v1827_v12  ;;  %v1764_v20 = vunpack.c.l.bf16 %v1827_v12  ;;  %v2229_v9 = vld [vmem:[%s2628_s3 + $0x78] sm:$0xff]  ;;  %v2249_v12 = vld [vmem:[%s2628_s3 + $0x60] sm:$0xff] }
  0x1e   :  { %280 = vmatpush.msra.mxu1 %v1633_v14  ;;  %261 = vmatpush.msra.mxu0 %v1600_v18  ;;  %v1768_v14 = vunpack.c.l.bf16 %v1828_v6  ;;  %v1826_v18 = vld [vmem:[%s2626_s2 + $0x148] sm:$0xff]  }
  0x1f   :  { %320 = vmatpush.msra.mxu3 %v1697_v15  ;;  %301 = vmatpush.msra.mxu2 %v1664_v19  ;;  %v1818_v15 = vld [vmem:[%s2626_s2 + $0x108] sm:$0xff]   ;;  %v1760_v26 = vunpack.c.l.bf16 %v1826_v18 }
  0x20   :  { %281 = vmatpush.msra.mxu1 %v1632_v22  ;;  %262 = vmatpush.msra.mxu0 %v1597_v24  ;;  %v1729_v19 = vunpack.c.h.bf16 %v1818_v15  ;;  %v1728_v22 = vunpack.c.l.bf16 %v1818_v15  ;;  %v1825_v24 = vld [vmem:[%s2626_s2 + $0x140] sm:$0xff]   ;;  %v2273_v15 = vld [vmem:[%s2628_s3 + $0x48] sm:$0xff] }
  0x21   :  { %321 = vmatpush.msra.mxu3 %v1696_v23  ;;  %302 = vmatpush.msra.mxu2 %v1661_v25  ;;  %v1761_v23 = vunpack.c.h.bf16 %v1826_v18  ;;  %v1725_v25 = vunpack.c.h.bf16 %v1817_v21  ;;  %v2286_v18 = vld [vmem:[%s2628_s3 + $0x40] sm:$0xff] }
  0x22   :  { %282 = vmatpush.msra.mxu1 %v1629_v27  ;;  %263 = vmatpush.msra.mxu0 %v1596_v29  ;;  %v1724_v27 = vunpack.c.l.bf16 %v1817_v21  ;;  %v54_v29 = vld [vmem:[%s2627_s0 + $0x20] sm:$0xff] }
  0x23   :  { %322 = vmatpush.msra.mxu3 %v1693_v28  ;;  %303 = vmatpush.msra.mxu2 %v1660_v30  ;;  %v1757_v28 = vunpack.c.h.bf16 %v1825_v24  ;;  %v1756_v30 = vunpack.c.l.bf16 %v1825_v24 }
  0x24   :  { %304 = vmatmul.f32.vlgmr.msra.gmra.mxu2 %v52_v33  ;;  %328 = vmatpush.msrb.mxu0 %v1753_v31  ;;  %v55_v31 = vld [vmem:[%s2627_s0 + $0x28] sm:$0xff] }
  0x25   :  { %414 = vmatpush.msrb.mxu2 %v20_v35  ;;  %283 = vmatpush.msra.mxu1 %v1628_v34 }
  0x26   :  { %323 = vmatpush.msra.mxu3 %v1692_v36  ;;  %329 = vmatpush.msrb.mxu0 %v1752_v37 }
  0x27   :  { %324 = vmatmul.f32.vlgmr.msra.gmra.mxu3 %v53_v40  ;;  %348 = vmatpush.msrb.mxu1 %v1785_v38  ;;  %v2211_v40 = vperm.slane %v2208_v39, 0 }
  0x28   :  { %415 = vmatpush.msrb.mxu2 %v19_v41  ;;  %463 = vmatpush.msrb.mxu3 %v2113_v42 }
  0x29   :  { %264 = vmatmul.f32.vlgmr.msra.gmra.mxu0 %v50_v44  ;;  %284 = vmatmul.f32.vlgmr.msra.gmra.mxu1 %v51_v45 }
  0x2a   :  { %330 = vmatpush.msrb.mxu0 %v1749_v46  ;;  %349 = vmatpush.msrb.mxu1 %v1784_v47 }
  0x2b   :  { %416 = vmatpush.msrb.mxu2 %v18_v49  ;;  %464 = vmatpush.msrb.mxu3 %v2134_v50  ;;  %v443_v49 = vlaneseq }
  0x2c   :  { %331 = vmatpush.msrb.mxu0 %v1748_v51  ;;  %350 = vmatpush.msrb.mxu1 %v1781_v52 }
  0x2d   :  { %417 = vmatpush.msrb.mxu2 %v17_v54  ;;  %465 = vmatpush.msrb.mxu3 %v2145_v55  ;;  %v444_v52 = vand.u32 127, %v443_v49 }
  0x2e   :  { %332 = vmatpush.msrb.mxu0 %v1745_v56  ;;  %351 = vmatpush.msrb.mxu1 %v1780_v57 }
  0x2f   :  { %1553 = vmatmul.msk.f32.vlgmr.msrb.gmra.mxu2 %vm377_vm0, %v368_v59  ;;  %466 = vmatpush.msrb.mxu3 %v2157_v60  ;;  %vm445_vm1 = vcmp.ge.s32.totalorder %v444_v52, 64  ;;  %vm446_vm2 = vcmp.lt.s32.totalorder %v444_v52, 96  ;;  %v39_v59 = vld [vmem:[%s2628_s3 + $0xb0] sm:$0xff] }
  0x30   :  { %333 = vmatpush.msrb.mxu0 %v1744_v61  ;;  %352 = vmatpush.msrb.mxu1 %v1777_v62  ;;  %vm2214_vm4 = vmand %vm445_vm1, %vm446_vm2 }
  0x31   :  { %467 = vmatmul.f32.vlgmr.msrb.gmra.mxu3 %v1965_v5  ;;  %1183 = vmatpush.msra.mxu2 %v2229_v9 }
  0x32   :  { %334 = vmatpush.msrb.mxu0 %v1741_v0  ;;  %353 = vmatpush.msrb.mxu1 %v1776_v1 }
  0x33   :  { %528 = vmatpush.msra.mxu3 %v2229_v9 }
  0x34   :  { %335 = vmatpush.msrb.mxu0 %v1740_v3  ;;  %354 = vmatpush.msrb.mxu1 %v1773_v4 }
  0x36   :  { %336 = vmatpush.msrb.mxu0 %v1737_v7  ;;  %355 = vmatpush.msrb.mxu1 %v1772_v8 }
  0x38   :  { %337 = vmatpush.msrb.mxu0 %v1736_v10  ;;  %356 = vmatpush.msrb.mxu1 %v1769_v11  ;;  %v2234_v10 = vld [vmem:[%s2628_s3 + $0x70] sm:$0xff]  ;;  %v2241_v11 = vld [vmem:[%s2628_s3 + $0x68] sm:$0xff] }
  0x39   :  { %529 = vmatpush.msra.mxu3 %v2234_v10  ;;  %1184 = vmatpush.msra.mxu2 %v2234_v10 }
  0x3a   :  { %338 = vmatpush.msrb.mxu0 %v1733_v13  ;;  %357 = vmatpush.msrb.mxu1 %v1768_v14  ;;  %v2257_v13 = vld [vmem:[%s2628_s3 + $0x58] sm:$0xff]  ;;  %v2265_v14 = vld [vmem:[%s2628_s3 + $0x50] sm:$0xff] }
  0x3b   :  { %530 = vmatpush.msra.mxu3 %v2241_v11  ;;  %1185 = vmatpush.msra.mxu2 %v2241_v11 }
  0x3c   :  { %339 = vmatpush.msrb.mxu0 %v1732_v16  ;;  %358 = vmatpush.msrb.mxu1 %v1765_v17 }
  0x3d   :  { %531 = vmatpush.msra.mxu3 %v2249_v12  ;;  %1186 = vmatpush.msra.mxu2 %v2249_v12 }
  0x3e   :  { %340 = vmatpush.msrb.mxu0 %v1729_v19  ;;  %359 = vmatpush.msrb.mxu1 %v1764_v20  ;;  %v369_v19 = vld [vmem:[%s2629_s1 + $0x8] sm:$0xff] }
  0x3f   :  { %532 = vmatpush.msra.mxu3 %v2257_v13  ;;  %1187 = vmatpush.msra.mxu2 %v2257_v13 }
  0x40   :  { %341 = vmatpush.msrb.mxu0 %v1728_v22  ;;  %360 = vmatpush.msrb.mxu1 %v1761_v23  ;;  %v2327_v22 = vperm.slane %v2208_v39, 1 }
  0x41   :  { %533 = vmatpush.msra.mxu3 %v2265_v14  ;;  %1188 = vmatpush.msra.mxu2 %v2265_v14 }
  0x42   :  { %342 = vmatpush.msrb.mxu0 %v1725_v25  ;;  %361 = vmatpush.msrb.mxu1 %v1760_v26 }
  0x43   :  { %534 = vmatpush.msra.mxu3 %v2273_v15  ;;  %1189 = vmatpush.msra.mxu2 %v2273_v15 }
  0x44   :  { %343 = vmatpush.msrb.mxu0 %v1724_v27  ;;  %362 = vmatpush.msrb.mxu1 %v1757_v28 }
  0x45   :  { %344 = vmatmul.f32.vlgmr.msrb.gmra.mxu0 %v54_v29  ;;  %535 = vmatpush.msra.mxu3 %v2286_v18 }
  0x46   :  { %363 = vmatpush.msrb.mxu1 %v1756_v30  ;;  %659 = vmatpush.msra.mxu0 %v2229_v9 }
  0x47   :  { %364 = vmatmul.f32.vlgmr.msrb.gmra.mxu1 %v55_v31  ;;  %592 = vmatpush.msrb.mxu3 %v2113_v42 }
  0x48   :  { %723 = vmatpush.msra.mxu1 %v2113_v42  ;;  %660 = vmatpush.msra.mxu0 %v2234_v10 }
  0x49   :  { %1554 = vmatmul.msk.f32.gmra.mxu2 %vm377_vm0, %v369_v19  ;;  %593 = vmatpush.msrb.mxu3 %v2134_v50 }
  0x4a   :  { %724 = vmatpush.msra.mxu1 %v2134_v50  ;;  %661 = vmatpush.msra.mxu0 %v2241_v11 }
  0x4b   :  { %1190 = vmatpush.msra.mxu2 %v2286_v18  ;;  %594 = vmatpush.msrb.mxu3 %v2145_v55 }
  0x4c   :  { %725 = vmatpush.msra.mxu1 %v2145_v55  ;;  %662 = vmatpush.msra.mxu0 %v2249_v12 }
  0x4d   :  { %595 = vmatpush.msrb.mxu3 %v2157_v60 }
  0x4e   :  { %726 = vmatpush.msra.mxu1 %v2157_v60  ;;  %663 = vmatpush.msra.mxu0 %v2257_v13 }
  0x50   :  { %854 = vmatpush.msrb.mxu1 %v2113_v42  ;;  %664 = vmatpush.msra.mxu0 %v2265_v14 }
  0x52   :  { %855 = vmatpush.msrb.mxu1 %v2134_v50  ;;  %665 = vmatpush.msra.mxu0 %v2273_v15 }
  0x54   :  { %856 = vmatpush.msrb.mxu1 %v2145_v55  ;;  %666 = vmatpush.msra.mxu0 %v2286_v18 }
  0x56   :  { %857 = vmatpush.msrb.mxu1 %v2157_v60  ;;  %921 = vmatpush.msrb.mxu0 %v2229_v9 }
  0x58   :  { %922 = vmatpush.msrb.mxu0 %v2234_v10 }
  0x5a   :  { %923 = vmatpush.msrb.mxu0 %v2241_v11 }
  0x5c   :  { %924 = vmatpush.msrb.mxu0 %v2249_v12 }
  0x5e   :  { %925 = vmatpush.msrb.mxu0 %v2257_v13 }
  0x60   :  { %926 = vmatpush.msrb.mxu0 %v2265_v14 }
  0x62   :  { %927 = vmatpush.msrb.mxu0 %v2273_v15 }
  0x64   :  { %928 = vmatpush.msrb.mxu0 %v2286_v18 }
  0xa6   :  { %v265_v32 = vpop.f32.mrf.mxu0  ;;  %v285_v33 = vpop.f32.mrf.mxu1 }
  0xa7   :  { %v286_v34 = vadd.f32 %v285_v33, %v265_v32  ;;  %v305_v35 = vpop.f32.mrf.mxu2 }
  0xa9   :  { %v306_v36 = vadd.f32 %v305_v35, %v286_v34 }
  0xaa   :  { %v325_v37 = vpop.f32.mrf.mxu3 }
  0xab   :  { %v2203_v38 = vadd.f32 %v325_v37, %v306_v36 }
  0xb2   :  { %v419_v41 = vpop.f32.mrf.mxu2 }
  0xb3   :  { %v420_v43 = vadd.f32 %v419_v41, %v2211_v40 }
  0xb4   :  { %v468_v44 = vpop.f32.mrf.mxu3 }
  0xb5   :  { %v471_v45 = vadd.f32 %v468_v44, %v420_v43 }
  0xb7   :  { %v1561_v46 = vmul.f32 -1.442695, %v471_v45 }
  0xb9   :  { %1836 = vpow2.f32 %v1561_v46 }
  0xbf   :  { %v1837_v47 = vpop.eup %1836 }
  0xc0   :  { %v476_v48 = vadd.f32 1.0, %v1837_v47 }
  0xc2   :  { %1838 = vrcp.f32 %v476_v48  ;;  %v488_v56 = vand.u32 2147483648, %v476_v48  ;;  %v486_v58 = vand.u32 2147483647, %v476_v48  ;;  %vm482_vm5 = vweird.f32 %v476_v48 }
  0xc3   :  { %1840 = vtanh.f32 %v471_v45 }
  0xc4   :  { %v489_v62 = vor.u32 1.1754944e-38, %v488_v56  ;;  %vm487_vm7 = vcmp.eq.f32.partialorder %v486_v58, 8.507059e+37 }
  0xc8   :  { %v1839_v51 = vpop.eup %1838 }
  0xc9   :  { %v478_v53 = vmul.f32 %v1839_v51, %v476_v48  ;;  %vm483_vm3 = vweird.f32 %v1839_v51  ;;  %v1841_v0 = vpop.eup %1840 }
  0xca   :  { %vm484_vm6 = vmor %vm482_vm5, %vm483_vm3 }
  0xcb   :  { %v479_v54 = vsub.f32 1.0, %v478_v53 }
  0xcc   :  { %v422_v25 = vpop.f32.mrf.mxu2 }
  0xcd   :  { %v480_v57 = vmul.f32 %v1839_v51, %v479_v54  ;;  %v423_v27 = vadd.f32 %v422_v25, %v2211_v40 }
  0xcf   :  { %v481_v61 = vadd.f32 %v1839_v51, %v480_v57 }
  0xd1   :  { %v485_v63 = vsel %vm484_vm6, %v1839_v51, %v481_v61 }
  0xd2   :  { %v490_v1 = vsel %vm487_vm7, %v489_v62, %v485_v63 }
  0xd3   :  { %v492_v2 = vsel %vm2214_vm4, %v1841_v0, %v490_v1 }
  0xd4   :  { %495 = vrot.lane.b32.xlu0 %v492_v2, %s1966_s11  ;;  %v493_v5 = vmul.f32 0.0, %v492_v2 }
 0x146   :  { %v496_v3 = vpop.permute.xlu0 %495 }
 0x147   :  { %v498_v4 = vmul.f32 %v496_v3, %v492_v2 }
 0x149   :  { %500 = vrot.lane.b32.xlu0 %v498_v4, %s1967_s12 }
 0x1bb   :  { %v501_v6 = vpop.permute.xlu0 %500 }
 0x1bc   :  { %v2222_v7 = vadd.f32 %v501_v6, %v493_v5 }
 0x1be   :  { %1842 = vtanh.f32 %v2222_v7 }
 0x1c4   :  { %v1843_v8 = vpop.eup %1842 }
 0x1c5   :  { %506 = vrot.lane.b32.xlu1 %v1843_v8, %s1966_s11 }
 0x237   :  { %v507_v16 = vpop.permute.xlu1 %506 }
 0x238   :  { %v509_v17 = vmul.f32 %v507_v16, %v492_v2 }
 0x23a   :  { %511 = vrot.lane.b32.xlu1 %v509_v17, %s1967_s12 }
 0x2ac   :  { %v512_v20 = vpop.permute.xlu1 %511 }
 0x2ad   :  { %v514_v21 = vsel %vm377_vm0, %v512_v20, 0.0 }
 0x2ae   :  { %1562 = vmatmul.msk.f32.vlgmr.msra.gmra.mxu3 %vm516_vm8, %v514_v21 }
 0x2af   :  { %790 = vmatpush.msra.mxu3 %v2229_v9 }
 0x2b1   :  { %791 = vmatpush.msra.mxu3 %v2234_v10 }
 0x2b3   :  { %792 = vmatpush.msra.mxu3 %v2241_v11 }
 0x2b5   :  { %793 = vmatpush.msra.mxu3 %v2249_v12 }
 0x2b6   :  { %1564 = vmatmul.msk.f32.vlgmr.msrb.gmra.mxu3 %vm377_vm0, %v512_v20 }
 0x2b7   :  { %794 = vmatpush.msra.mxu3 %v2257_v13 }
 0x2b9   :  { %795 = vmatpush.msra.mxu3 %v2265_v14 }
 0x2bb   :  { %796 = vmatpush.msra.mxu3 %v2273_v15 }
 0x2bd   :  { %797 = vmatpush.msra.mxu3 %v2286_v18 }
 0x2bf   :  { %1052 = vmatpush.msrb.mxu3 %v2229_v9 }
 0x2c1   :  { %1053 = vmatpush.msrb.mxu3 %v2234_v10 }
 0x2c3   :  { %1054 = vmatpush.msrb.mxu3 %v2241_v11 }
 0x2c5   :  { %1055 = vmatpush.msrb.mxu3 %v2249_v12 }
 0x2c7   :  { %1056 = vmatpush.msrb.mxu3 %v2257_v13 }
 0x2c9   :  { %1057 = vmatpush.msrb.mxu3 %v2265_v14 }
 0x2cb   :  { %1058 = vmatpush.msrb.mxu3 %v2273_v15 }
 0x2cd   :  { %1059 = vmatpush.msrb.mxu3 %v2286_v18 }
 0x331   :  { %v537_v23 = vpop.f32.mrf.mxu3 }
 0x332   :  { %v538_v24 = vadd.f32 %v537_v23, %v2327_v22 }
 0x334   :  { %v1563_v26 = vmul.f32 -1.442695, %v538_v24 }
 0x336   :  { %1844 = vpow2.f32 %v1563_v26 }
 0x339   :  { %v597_v28 = vpop.f32.mrf.mxu3 }
 0x33a   :  { %v600_v29 = vadd.f32 %v597_v28, %v423_v27 }
 0x33c   :  { %v1845_v30 = vpop.eup %1844  ;;  %v1565_v31 = vmul.f32 -1.442695, %v600_v29 }
 0x33d   :  { %v544_v32 = vadd.f32 1.0, %v1845_v30 }
 0x33e   :  { %1846 = vpow2.f32 %v1565_v31  ;;  %v2365_v31 = vpop.f32.mrf.mxu1 }
 0x33f   :  { %1848 = vrcp.f32 %v544_v32  ;;  %v556_v39 = vand.u32 2147483648, %v544_v32  ;;  %v554_v43 = vand.u32 2147483647, %v544_v32  ;;  %vm550_vm10 = vweird.f32 %v544_v32 }
 0x341   :  { %v557_v46 = vor.u32 1.1754944e-38, %v556_v39  ;;  %vm555_vm12 = vcmp.eq.f32.partialorder %v554_v43, 8.507059e+37 }
 0x344   :  { %v1847_v33 = vpop.eup %1846 }
 0x345   :  { %v1849_v34 = vpop.eup %1848  ;;  %v605_v35 = vadd.f32 1.0, %v1847_v33 }
 0x346   :  { %v546_v36 = vmul.f32 %v1849_v34, %v544_v32  ;;  %vm551_vm9 = vweird.f32 %v1849_v34  ;;  %v2367_v32 = vpop.f32.mrf.mxu0 }
 0x347   :  { %1850 = vrcp.f32 %v605_v35  ;;  %vm552_vm11 = vmor %vm550_vm10, %vm551_vm9  ;;  %v617_v54 = vand.u32 2147483648, %v605_v35  ;;  %v615_v57 = vand.u32 2147483647, %v605_v35  ;;  %vm611_vm14 = vweird.f32 %v605_v35 }
 0x348   :  { %v547_v37 = vsub.f32 1.0, %v546_v36  ;;  %1852 = vtanh.f32 %v538_v24 }
 0x349   :  { %1854 = vtanh.f32 %v600_v29  ;;  %v618_v61 = vor.u32 1.1754944e-38, %v617_v54  ;;  %vm616_vm1 = vcmp.eq.f32.partialorder %v615_v57, 8.507059e+37 }
 0x34a   :  { %v548_v41 = vmul.f32 %v1849_v34, %v547_v37 }
 0x34c   :  { %v549_v44 = vadd.f32 %v1849_v34, %v548_v41 }
 0x34d   :  { %v1851_v45 = vpop.eup %1850 }
 0x34e   :  { %v553_v47 = vsel %vm552_vm11, %v1849_v34, %v549_v44  ;;  %v607_v48 = vmul.f32 %v1851_v45, %v605_v35  ;;  %v1853_v49 = vpop.eup %1852  ;;  %vm612_vm13 = vweird.f32 %v1851_v45 }
 0x34f   :  { %v558_v51 = vsel %vm555_vm12, %v557_v46, %v553_v47  ;;  %vm613_vm15 = vmor %vm611_vm14, %vm612_vm13  ;;  %v1855_v63 = vpop.eup %1854 }
 0x350   :  { %v560_v52 = vsel %vm2214_vm4, %v1853_v49, %v558_v51  ;;  %v608_v53 = vsub.f32 1.0, %v607_v48 }
 0x351   :  { %563 = vrot.lane.b32.xlu2 %v560_v52, %s1966_s11  ;;  %v561_v6 = vmul.f32 0.0, %v560_v52 }
 0x352   :  { %v609_v56 = vmul.f32 %v1851_v45, %v608_v53 }
 0x354   :  { %v610_v58 = vadd.f32 %v1851_v45, %v609_v56 }
 0x356   :  { %v614_v62 = vsel %vm613_vm15, %v1851_v45, %v610_v58 }
 0x357   :  { %v619_v0 = vsel %vm616_vm1, %v618_v61, %v614_v62 }
 0x358   :  { %v621_v1 = vsel %vm2214_vm4, %v1855_v63, %v619_v0 }
 0x359   :  { %624 = vrot.lane.b32.xlu2 %v621_v1, %s1966_s11  ;;  %v622_v17 = vmul.f32 %v621_v1, %v2222_v7  ;;  %v370_v7 = vld [vmem:[%s2629_s1 + $0x10] sm:$0xff] }
 0x35a   :  { %1555 = vmatmul.msk.f32.gmra.mxu2 %vm377_vm0, %v370_v7 }
 0x3ab   :  { %v564_v2 = vpop.permute.xlu2 %563 }
 0x3ac   :  { %v566_v3 = vmul.f32 %v564_v2, %v560_v52 }
 0x3ae   :  { %568 = vrot.lane.b32.xlu0 %v566_v3, %s1967_s12 }
 0x3b3   :  { %v625_v4 = vpop.permute.xlu2 %624 }
 0x3b4   :  { %v627_v5 = vmul.f32 %v625_v4, %v621_v1 }
 0x3b6   :  { %629 = vrot.lane.b32.xlu1 %v627_v5, %s1967_s12 }
 0x3dd   :  { %v425_v33 = vpop.f32.mrf.mxu2 }
 0x3de   :  { %v426_v34 = vadd.f32 %v425_v33, %v2211_v40 }
 0x420   :  { %v569_v8 = vpop.permute.xlu0 %568 }
 0x421   :  { %v2339_v16 = vadd.f32 %v569_v8, %v561_v6 }
 0x423   :  { %1856 = vtanh.f32 %v2339_v16 }
 0x428   :  { %v630_v19 = vpop.permute.xlu1 %629 }
 0x429   :  { %v1857_v20 = vpop.eup %1856  ;;  %v2343_v21 = vadd.f32 %v630_v19, %v622_v17 }
 0x42a   :  { %574 = vrot.lane.b32.xlu2 %v1857_v20, %s1966_s11 }
 0x42b   :  { %1858 = vtanh.f32 %v2343_v21 }
 0x431   :  { %v1859_v23 = vpop.eup %1858 }
 0x432   :  { %635 = vrot.lane.b32.xlu0 %v1859_v23, %s1966_s11 }
 0x484   :  { %v575_v24 = vpop.permute.xlu2 %574 }
 0x485   :  { %v577_v25 = vmul.f32 %v575_v24, %v560_v52 }
 0x487   :  { %644 = vrot.lane.b32.xlu2 %v577_v25, %s1966_s11 }
 0x4a4   :  { %v636_v26 = vpop.permute.xlu0 %635 }
 0x4a5   :  { %v638_v27 = vmul.f32 %v636_v26, %v621_v1 }
 0x4a7   :  { %640 = vrot.lane.b32.xlu1 %v638_v27, %s1967_s12 }
 0x4e1   :  { %v645_v28 = vpop.permute.xlu2 %644 }
 0x519   :  { %v641_v29 = vpop.permute.xlu1 %640 }
 0x51a   :  { %v647_v30 = vsel %vm377_vm0, %v641_v29, %v645_v28  ;;  %1568 = vmatmul.msk.f32.vlgmr.msra.gmra.mxu1 %vm377_vm0, %v641_v29 }
 0x51b   :  { %1566 = vmatmul.msk.f32.vlgmr.msra.gmra.mxu0 %vm516_vm8, %v647_v30  ;;  %985 = vmatpush.msra.mxu1 %v2113_v42 }
 0x51c   :  { %1247 = vmatpush.msra.mxu0 %v2113_v42 }
 0x51d   :  { %986 = vmatpush.msra.mxu1 %v2134_v50 }
 0x51e   :  { %1248 = vmatpush.msra.mxu0 %v2134_v50 }
 0x51f   :  { %987 = vmatpush.msra.mxu1 %v2145_v55 }
 0x520   :  { %1249 = vmatpush.msra.mxu0 %v2145_v55 }
 0x521   :  { %988 = vmatpush.msra.mxu1 %v2157_v60 }
 0x522   :  { %1250 = vmatpush.msra.mxu0 %v2157_v60 }
 0x597   :  { %v728_v35 = vpop.f32.mrf.mxu1 }
 0x598   :  { %v731_v36 = vadd.f32 %v728_v35, %v426_v34  ;;  %v668_v37 = vpop.f32.mrf.mxu0 }
 0x599   :  { %v669_v39 = vadd.f32 %v668_v37, %v2327_v22 }
 0x59a   :  { %v1569_v41 = vmul.f32 -1.442695, %v731_v36 }
 0x59b   :  { %v1567_v43 = vmul.f32 -1.442695, %v669_v39 }
 0x59c   :  { %1860 = vpow2.f32 %v1569_v41 }
 0x59d   :  { %1862 = vpow2.f32 %v1567_v43 }
 0x5a2   :  { %v1861_v44 = vpop.eup %1860 }
 0x5a3   :  { %v1863_v45 = vpop.eup %1862  ;;  %v736_v46 = vadd.f32 1.0, %v1861_v44 }
 0x5a4   :  { %v675_v47 = vadd.f32 1.0, %v1863_v45 }
 0x5a5   :  { %1864 = vrcp.f32 %v736_v46  ;;  %v748_v54 = vand.u32 2147483648, %v736_v46  ;;  %v746_v58 = vand.u32 2147483647, %v736_v46  ;;  %vm742_vm5 = vweird.f32 %v736_v46 }
 0x5a6   :  { %1866 = vrcp.f32 %v675_v47  ;;  %v687_v61 = vand.u32 2147483648, %v675_v47  ;;  %v685_v63 = vand.u32 2147483647, %v675_v47  ;;  %vm681_vm7 = vweird.f32 %v675_v47 }
 0x5a7   :  { %1868 = vtanh.f32 %v731_v36  ;;  %v749_v1 = vor.u32 1.1754944e-38, %v748_v54  ;;  %vm747_vm9 = vcmp.eq.f32.partialorder %v746_v58, 8.507059e+37 }
 0x5a8   :  { %1870 = vtanh.f32 %v669_v39  ;;  %v688_v5 = vor.u32 1.1754944e-38, %v687_v61  ;;  %vm686_vm11 = vcmp.eq.f32.partialorder %v685_v63, 8.507059e+37 }
 0x5ab   :  { %v1865_v48 = vpop.eup %1864 }
 0x5ac   :  { %v1867_v49 = vpop.eup %1866  ;;  %v738_v51 = vmul.f32 %v1865_v48, %v736_v46  ;;  %vm743_vm2 = vweird.f32 %v1865_v48 }
 0x5ad   :  { %v677_v52 = vmul.f32 %v1867_v49, %v675_v47  ;;  %vm682_vm3 = vweird.f32 %v1867_v49  ;;  %vm744_vm6 = vmor %vm742_vm5, %vm743_vm2  ;;  %v1869_v3 = vpop.eup %1868 }
 0x5ae   :  { %v739_v53 = vsub.f32 1.0, %v738_v51  ;;  %vm683_vm10 = vmor %vm681_vm7, %vm682_vm3  ;;  %v1871_v6 = vpop.eup %1870 }
 0x5af   :  { %v678_v56 = vsub.f32 1.0, %v677_v52 }
 0x5b0   :  { %v740_v57 = vmul.f32 %v1865_v48, %v739_v53 }
 0x5b1   :  { %v679_v62 = vmul.f32 %v1867_v49, %v678_v56 }
 0x5b2   :  { %v741_v0 = vadd.f32 %v1865_v48, %v740_v57 }
 0x5b3   :  { %v680_v2 = vadd.f32 %v1867_v49, %v679_v62 }
 0x5b4   :  { %v745_v4 = vsel %vm744_vm6, %v1865_v48, %v741_v0 }
 0x5b5   :  { %v750_v8 = vsel %vm747_vm9, %v749_v1, %v745_v4  ;;  %v684_v17 = vsel %vm683_vm10, %v1867_v49, %v680_v2 }
 0x5b6   :  { %v752_v19 = vsel %vm2214_vm4, %v1869_v3, %v750_v8  ;;  %v689_v20 = vsel %vm686_vm11, %v688_v5, %v684_v17 }
 0x5b7   :  { %755 = vrot.lane.b32.xlu1 %v752_v19, %s1966_s11  ;;  %v691_v23 = vsel %vm2214_vm4, %v1871_v6, %v689_v20  ;;  %v753_v33 = vmul.f32 %v752_v19, %v2343_v21 }
 0x5b8   :  { %694 = vrot.lane.b32.xlu0 %v691_v23, %s1966_s11  ;;  %v692_v7 = vmul.f32 %v691_v23, %v2339_v16  ;;  %v371_v16 = vld [vmem:[%s2629_s1 + $0x18] sm:$0xff] }
 0x5b9   :  { %1556 = vmatmul.msk.f32.gmra.mxu2 %vm377_vm0, %v371_v16 }
 0x629   :  { %v756_v24 = vpop.permute.xlu1 %755 }
 0x62a   :  { %v758_v25 = vmul.f32 %v756_v24, %v752_v19  ;;  %v695_v26 = vpop.permute.xlu0 %694 }
 0x62b   :  { %v697_v27 = vmul.f32 %v695_v26, %v691_v23 }
 0x62c   :  { %760 = vrot.lane.b32.xlu0 %v758_v25, %s1967_s12 }
 0x62d   :  { %699 = vrot.lane.b32.xlu2 %v697_v27, %s1967_s12 }
 0x63c   :  { %v428_v46 = vpop.f32.mrf.mxu2 }
 0x63d   :  { %v429_v47 = vadd.f32 %v428_v46, %v2211_v40 }
 0x687   :  { %v700_v28 = vpop.permute.xlu2 %699 }
 0x688   :  { %v2380_v29 = vadd.f32 %v700_v28, %v692_v7 }
 0x68a   :  { %1872 = vtanh.f32 %v2380_v29 }
 0x690   :  { %v1873_v30 = vpop.eup %1872 }
 0x691   :  { %705 = vrot.lane.b32.xlu1 %v1873_v30, %s1966_s11 }
 0x69e   :  { %v761_v34 = vpop.permute.xlu0 %760 }
 0x69f   :  { %v2385_v35 = vadd.f32 %v761_v34, %v753_v33 }
 0x6a1   :  { %1874 = vtanh.f32 %v2385_v35 }
 0x6a7   :  { %v1875_v36 = vpop.eup %1874 }
 0x6a8   :  { %766 = vrot.lane.b32.xlu2 %v1875_v36, %s1966_s11 }
 0x702   :  { %v767_v37 = vpop.permute.xlu2 %766 }
 0x703   :  { %v769_v39 = vmul.f32 %v767_v37, %v752_v19  ;;  %v706_v41 = vpop.permute.xlu1 %705 }
 0x704   :  { %v708_v43 = vmul.f32 %v706_v41, %v691_v23 }
 0x705   :  { %771 = vrot.lane.b32.xlu0 %v769_v39, %s1967_s12 }
 0x706   :  { %775 = vrot.lane.b32.xlu1 %v708_v43, %s1966_s11 }
 0x777   :  { %v772_v21 = vpop.permute.xlu0 %771 }
 0x778   :  { %1572 = vmatmul.msk.f32.vlgmr.msrb.gmra.mxu1 %vm377_vm0, %v772_v21  ;;  %v776_v44 = vpop.permute.xlu1 %775 }
 0x779   :  { %v778_v45 = vsel %vm377_vm0, %v772_v21, %v776_v44  ;;  %1116 = vmatpush.msrb.mxu1 %v2113_v42 }
 0x77a   :  { %1570 = vmatmul.msk.f32.vlgmr.msra.gmra.mxu3 %vm516_vm8, %v778_v45 }
 0x77b   :  { %1117 = vmatpush.msrb.mxu1 %v2134_v50  ;;  %1378 = vmatpush.msra.mxu3 %v2113_v42 }
 0x77d   :  { %1118 = vmatpush.msrb.mxu1 %v2145_v55  ;;  %1379 = vmatpush.msra.mxu3 %v2134_v50 }
 0x77f   :  { %1119 = vmatpush.msrb.mxu1 %v2157_v60  ;;  %1380 = vmatpush.msra.mxu3 %v2145_v55 }
 0x781   :  { %1381 = vmatpush.msra.mxu3 %v2157_v60 }
 0x7f5   :  { %v859_v48 = vpop.f32.mrf.mxu1 }
 0x7f6   :  { %v862_v49 = vadd.f32 %v859_v48, %v429_v47 }
 0x7f8   :  { %v1573_v51 = vmul.f32 -1.442695, %v862_v49 }
 0x7fa   :  { %1876 = vpow2.f32 %v1573_v51 }
 0x7fd   :  { %v799_v52 = vpop.f32.mrf.mxu3 }
 0x7fe   :  { %v800_v42 = vadd.f32 %v799_v52, %v2327_v22 }
 0x800   :  { %v1877_v53 = vpop.eup %1876  ;;  %v1571_v54 = vmul.f32 -1.442695, %v800_v42 }
 0x801   :  { %v867_v56 = vadd.f32 1.0, %v1877_v53 }
 0x802   :  { %1878 = vpow2.f32 %v1571_v54 }
 0x803   :  { %1880 = vrcp.f32 %v867_v56  ;;  %v879_v61 = vand.u32 2147483648, %v867_v56  ;;  %v877_v63 = vand.u32 2147483647, %v867_v56  ;;  %vm873_vm13 = vweird.f32 %v867_v56 }
 0x805   :  { %v880_v2 = vor.u32 1.1754944e-38, %v879_v61  ;;  %vm878_vm15 = vcmp.eq.f32.partialorder %v877_v63, 8.507059e+37 }
 0x808   :  { %v1879_v50 = vpop.eup %1878 }
 0x809   :  { %v1881_v57 = vpop.eup %1880  ;;  %v806_v55 = vadd.f32 1.0, %v1879_v50 }
 0x80a   :  { %v869_v58 = vmul.f32 %v1881_v57, %v867_v56  ;;  %vm874_vm12 = vweird.f32 %v1881_v57 }
 0x80b   :  { %1882 = vrcp.f32 %v806_v55  ;;  %vm875_vm14 = vmor %vm873_vm13, %vm874_vm12  ;;  %v818_v19 = vand.u32 2147483648, %v806_v55  ;;  %v816_v23 = vand.u32 2147483647, %v806_v55  ;;  %vm812_vm2 = vweird.f32 %v806_v55 }
 0x80c   :  { %v870_v60 = vsub.f32 1.0, %v869_v58  ;;  %1884 = vtanh.f32 %v862_v49 }
 0x80d   :  { %1886 = vtanh.f32 %v800_v42  ;;  %v819_v25 = vor.u32 1.1754944e-38, %v818_v19  ;;  %vm817_vm5 = vcmp.eq.f32.partialorder %v816_v23, 8.507059e+37 }
 0x80e   :  { %v871_v62 = vmul.f32 %v1881_v57, %v870_v60 }
 0x810   :  { %v872_v0 = vadd.f32 %v1881_v57, %v871_v62 }
 0x811   :  { %v1883_v1 = vpop.eup %1882 }
 0x812   :  { %v876_v3 = vsel %vm875_vm14, %v1881_v57, %v872_v0  ;;  %v808_v4 = vmul.f32 %v1883_v1, %v806_v55  ;;  %v1885_v5 = vpop.eup %1884  ;;  %vm813_vm1 = vweird.f32 %v1883_v1 }
 0x813   :  { %v881_v6 = vsel %vm878_vm15, %v880_v2, %v876_v3  ;;  %vm814_vm3 = vmor %vm812_vm2, %vm813_vm1  ;;  %v1887_v27 = vpop.eup %1886 }
 0x814   :  { %v883_v8 = vsel %vm2214_vm4, %v1885_v5, %v881_v6  ;;  %v809_v17 = vsub.f32 1.0, %v808_v4 }
 0x815   :  { %886 = vrot.lane.b32.xlu0 %v883_v8, %s1966_s11  ;;  %v884_v16 = vmul.f32 %v883_v8, %v2385_v35  ;;  %v372_v35 = vld [vmem:[%s2629_s1 + $0x20] sm:$0xff] }
 0x816   :  { %v810_v20 = vmul.f32 %v1883_v1, %v809_v17  ;;  %1557 = vmatmul.msk.f32.gmra.mxu2 %vm377_vm0, %v372_v35 }
 0x818   :  { %v811_v24 = vadd.f32 %v1883_v1, %v810_v20 }
 0x81a   :  { %v815_v26 = vsel %vm814_vm3, %v1883_v1, %v811_v24 }
 0x81b   :  { %v820_v7 = vsel %vm817_vm5, %v819_v25, %v815_v26 }
 0x81c   :  { %v822_v28 = vsel %vm2214_vm4, %v1887_v27, %v820_v7 }
 0x81d   :  { %825 = vrot.lane.b32.xlu2 %v822_v28, %s1966_s11  ;;  %v823_v41 = vmul.f32 %v822_v28, %v2380_v29 }
 0x877   :  { %v826_v30 = vpop.permute.xlu2 %825 }
 0x878   :  { %v828_v33 = vmul.f32 %v826_v30, %v822_v28 }
 0x87a   :  { %830 = vrot.lane.b32.xlu1 %v828_v33, %s1967_s12 }
 0x887   :  { %v887_v34 = vpop.permute.xlu0 %886 }
 0x888   :  { %v889_v36 = vmul.f32 %v887_v34, %v883_v8 }
 0x88a   :  { %891 = vrot.lane.b32.xlu2 %v889_v36, %s1967_s12 }
 0x899   :  { %v431_v42 = vpop.f32.mrf.mxu2 }
 0x89a   :  { %v432_v53 = vadd.f32 %v431_v42, %v2211_v40 }
 0x8e4   :  { %v892_v37 = vpop.permute.xlu2 %891 }
 0x8e5   :  { %v2417_v39 = vadd.f32 %v892_v37, %v884_v16 }
 0x8e7   :  { %1888 = vtanh.f32 %v2417_v39 }
 0x8ec   :  { %v831_v43 = vpop.permute.xlu1 %830 }
 0x8ed   :  { %v1889_v21 = vpop.eup %1888  ;;  %v2421_v44 = vadd.f32 %v831_v43, %v823_v41 }
 0x8ee   :  { %897 = vrot.lane.b32.xlu1 %v1889_v21, %s1966_s11 }
 0x8ef   :  { %1890 = vtanh.f32 %v2421_v44 }
 0x8f5   :  { %v1891_v45 = vpop.eup %1890 }
 0x8f6   :  { %836 = vrot.lane.b32.xlu0 %v1891_v45, %s1966_s11 }
 0x960   :  { %v898_v46 = vpop.permute.xlu1 %897 }
 0x961   :  { %v900_v47 = vmul.f32 %v898_v46, %v883_v8  ;;  %v373_v46 = vld [vmem:[%s2629_s1 + $0x28] sm:$0xff] }
 0x962   :  { %1558 = vmatmul.msk.f32.gmra.mxu2 %vm377_vm0, %v373_v46 }
 0x963   :  { %902 = vrot.lane.b32.xlu2 %v900_v47, %s1967_s12 }
 0x968   :  { %v837_v29 = vpop.permute.xlu0 %836 }
 0x969   :  { %v839_v48 = vmul.f32 %v837_v29, %v822_v28 }
 0x96b   :  { %906 = vrot.lane.b32.xlu0 %v839_v48, %s1966_s11 }
 0x9bd   :  { %v903_v49 = vpop.permute.xlu2 %902 }
 0x9be   :  { %1576 = vmatmul.msk.f32.vlgmr.msra.gmra.mxu1 %vm377_vm0, %v903_v49 }
 0x9bf   :  { %1314 = vmatpush.msra.mxu1 %v2229_v9 }
 0x9c1   :  { %1315 = vmatpush.msra.mxu1 %v2234_v10 }
 0x9c3   :  { %1316 = vmatpush.msra.mxu1 %v2241_v11 }
 0x9c5   :  { %1317 = vmatpush.msra.mxu1 %v2249_v12 }
 0x9c7   :  { %1318 = vmatpush.msra.mxu1 %v2257_v13 }
 0x9c9   :  { %1319 = vmatpush.msra.mxu1 %v2265_v14 }
 0x9cb   :  { %1320 = vmatpush.msra.mxu1 %v2273_v15 }
 0x9cd   :  { %1321 = vmatpush.msra.mxu1 %v2286_v18 }
 0x9dd   :  { %v907_v51 = vpop.permute.xlu0 %906 }
 0x9de   :  { %v909_v52 = vsel %vm377_vm0, %v903_v49, %v907_v51 }
 0x9df   :  { %1574 = vmatmul.msk.f32.vlgmr.msrb.gmra.mxu0 %vm516_vm8, %v909_v52 }
 0x9e0   :  { %1445 = vmatpush.msrb.mxu0 %v2229_v9 }
 0x9e2   :  { %1446 = vmatpush.msrb.mxu0 %v2234_v10 }
 0x9e4   :  { %1447 = vmatpush.msrb.mxu0 %v2241_v11 }
 0x9e5   :  { %v434_v51 = vpop.f32.mrf.mxu2 }
 0x9e6   :  { %1448 = vmatpush.msrb.mxu0 %v2249_v12  ;;  %v435_v52 = vadd.f32 %v434_v51, %v2211_v40 }
 0x9e8   :  { %1449 = vmatpush.msrb.mxu0 %v2257_v13 }
 0x9ea   :  { %1450 = vmatpush.msrb.mxu0 %v2265_v14 }
 0x9ec   :  { %1451 = vmatpush.msrb.mxu0 %v2273_v15 }
 0x9ee   :  { %1452 = vmatpush.msrb.mxu0 %v2286_v18 }
 0xa3b   :  { %v990_v54 = vpop.f32.mrf.mxu1 }
 0xa3c   :  { %v993_v56 = vadd.f32 %v990_v54, %v432_v53 }
 0xa3e   :  { %v1577_v9 = vmul.f32 -1.442695, %v993_v56 }
 0xa40   :  { %1892 = vpow2.f32 %v1577_v9 }
 0xa46   :  { %v1893_v10 = vpop.eup %1892 }
 0xa47   :  { %v998_v50 = vadd.f32 1.0, %v1893_v10 }
 0xa49   :  { %1894 = vrcp.f32 %v998_v50  ;;  %v1010_v13 = vand.u32 2147483648, %v998_v50  ;;  %v1008_v15 = vand.u32 2147483647, %v998_v50  ;;  %vm1004_vm7 = vweird.f32 %v998_v50 }
 0xa4a   :  { %1896 = vtanh.f32 %v993_v56 }
 0xa4b   :  { %v1011_v18 = vor.u32 1.1754944e-38, %v1010_v13  ;;  %vm1009_vm10 = vcmp.eq.f32.partialorder %v1008_v15, 8.507059e+37 }
 0xa4f   :  { %v1895_v11 = vpop.eup %1894 }
 0xa50   :  { %v1000_v12 = vmul.f32 %v1895_v11, %v998_v50  ;;  %vm1005_vm6 = vweird.f32 %v1895_v11  ;;  %v1897_v60 = vpop.eup %1896 }
 0xa51   :  { %vm1006_vm9 = vmor %vm1004_vm7, %vm1005_vm6 }
 0xa52   :  { %v1001_v57 = vsub.f32 1.0, %v1000_v12 }
 0xa54   :  { %v1002_v14 = vmul.f32 %v1895_v11, %v1001_v57 }
 0xa56   :  { %v1003_v55 = vadd.f32 %v1895_v11, %v1002_v14 }
 0xa58   :  { %v1007_v58 = vsel %vm1006_vm9, %v1895_v11, %v1003_v55 }
 0xa59   :  { %v1012_v61 = vsel %vm1009_vm10, %v1011_v18, %v1007_v58 }
 0xa5a   :  { %v1014_v62 = vsel %vm2214_vm4, %v1897_v60, %v1012_v61 }
 0xa5b   :  { %1017 = vrot.lane.b32.xlu2 %v1014_v62, %s1966_s11  ;;  %v1015_v34 = vmul.f32 %v1014_v62, %v2417_v39 }
 0xa5c   :  { %v930_v63 = vpop.f32.mrf.mxu0 }
 0xa5d   :  { %v931_v0 = vadd.f32 %v930_v63, %v2327_v22 }
 0xa5f   :  { %v1575_v1 = vmul.f32 -1.442695, %v931_v0 }
 0xa61   :  { %1898 = vpow2.f32 %v1575_v1 }
 0xa67   :  { %v1899_v2 = vpop.eup %1898 }
 0xa68   :  { %v937_v3 = vadd.f32 1.0, %v1899_v2 }
 0xa6a   :  { %1900 = vrcp.f32 %v937_v3  ;;  %v949_v8 = vand.u32 2147483648, %v937_v3  ;;  %v947_v19 = vand.u32 2147483647, %v937_v3  ;;  %vm943_vm12 = vweird.f32 %v937_v3 }
 0xa6b   :  { %1902 = vtanh.f32 %v931_v0 }
 0xa6c   :  { %v950_v23 = vor.u32 1.1754944e-38, %v949_v8  ;;  %vm948_vm14 = vcmp.eq.f32.partialorder %v947_v19, 8.507059e+37 }
 0xa70   :  { %v1901_v4 = vpop.eup %1900 }
 0xa71   :  { %v939_v5 = vmul.f32 %v1901_v4, %v937_v3  ;;  %vm944_vm11 = vweird.f32 %v1901_v4  ;;  %v1903_v25 = vpop.eup %1902 }
 0xa72   :  { %vm945_vm13 = vmor %vm943_vm12, %vm944_vm11 }
 0xa73   :  { %v940_v6 = vsub.f32 1.0, %v939_v5 }
 0xa75   :  { %v941_v17 = vmul.f32 %v1901_v4, %v940_v6 }
 0xa77   :  { %v942_v20 = vadd.f32 %v1901_v4, %v941_v17 }
 0xa79   :  { %v946_v24 = vsel %vm945_vm13, %v1901_v4, %v942_v20 }
 0xa7a   :  { %v951_v26 = vsel %vm948_vm14, %v950_v23, %v946_v24 }
 0xa7b   :  { %v953_v27 = vsel %vm2214_vm4, %v1903_v25, %v951_v26 }
 0xa7c   :  { %956 = vrot.lane.b32.xlu1 %v953_v27, %s1966_s11  ;;  %v954_v41 = vmul.f32 %v953_v27, %v2421_v44 }
 0xab5   :  { %v1018_v7 = vpop.permute.xlu2 %1017 }
 0xab6   :  { %v1020_v28 = vmul.f32 %v1018_v7, %v1014_v62 }
 0xab8   :  { %1022 = vrot.lane.b32.xlu1 %v1020_v28, %s1967_s12 }
 0xaee   :  { %v957_v30 = vpop.permute.xlu1 %956 }
 0xaef   :  { %v959_v33 = vmul.f32 %v957_v30, %v953_v27 }
 0xaf1   :  { %961 = vrot.lane.b32.xlu0 %v959_v33, %s1967_s12 }
 0xb2a   :  { %v1023_v36 = vpop.permute.xlu1 %1022 }
 0xb2b   :  { %v2462_v16 = vadd.f32 %v1023_v36, %v1015_v34 }
 0xb2d   :  { %1904 = vtanh.f32 %v2462_v16 }
 0xb33   :  { %v1905_v37 = vpop.eup %1904 }
 0xb34   :  { %1028 = vrot.lane.b32.xlu0 %v1905_v37, %s1966_s11 }
 0xb63   :  { %v962_v43 = vpop.permute.xlu0 %961 }
 0xb64   :  { %v2467_v21 = vadd.f32 %v962_v43, %v954_v41 }
 0xb66   :  { %1906 = vtanh.f32 %v2467_v21 }
 0xb6c   :  { %v1907_v45 = vpop.eup %1906 }
 0xb6d   :  { %967 = vrot.lane.b32.xlu2 %v1907_v45, %s1966_s11 }
 0xba6   :  { %v1029_v35 = vpop.permute.xlu0 %1028 }
 0xba7   :  { %v1031_v39 = vmul.f32 %v1029_v35, %v1014_v62 }
 0xba9   :  { %1033 = vrot.lane.b32.xlu1 %v1031_v39, %s1967_s12 }
 0xbc7   :  { %v968_v47 = vpop.permute.xlu2 %967 }
 0xbc8   :  { %v970_v44 = vmul.f32 %v968_v47, %v953_v27  ;;  %v375_v47 = vld [vmem:[%s2629_s1 + $0x38] sm:$0xff] }
 0xbca   :  { %1037 = vrot.lane.b32.xlu2 %v970_v44, %s1966_s11 }
 0xc1b   :  { %v1034_v29 = vpop.permute.xlu1 %1033 }
 0xc1c   :  { %1580 = vmatmul.msk.f32.vlgmr.msrb.gmra.mxu1 %vm377_vm0, %v1034_v29 }
 0xc24   :  { %v1038_v48 = vpop.permute.xlu2 %1037 }
 0xc25   :  { %v1040_v49 = vsel %vm377_vm0, %v1034_v29, %v1038_v48 }
 0xc26   :  { %1578 = vmatmul.msk.f32.vlgmr.msrb.gmra.mxu3 %vm516_vm8, %v1040_v49 }
 0xc99   :  { %v1121_v42 = vpop.f32.mrf.mxu1 }
 0xc9a   :  { %v1124_v53 = vadd.f32 %v1121_v42, %v435_v52 }
 0xc9c   :  { %v1581_v54 = vmul.f32 -1.442695, %v1124_v53 }
 0xc9e   :  { %1908 = vpow2.f32 %v1581_v54 }
 0xca4   :  { %v1909_v56 = vpop.eup %1908 }
 0xca5   :  { %v1129_v9 = vadd.f32 1.0, %v1909_v56 }
 0xca7   :  { %1910 = vrcp.f32 %v1129_v9  ;;  %v1141_v14 = vand.u32 2147483648, %v1129_v9  ;;  %v1139_v55 = vand.u32 2147483647, %v1129_v9  ;;  %vm1135_vm1 = vweird.f32 %v1129_v9 }
 0xca9   :  { %v1061_v10 = vpop.f32.mrf.mxu3  ;;  %v1142_v61 = vor.u32 1.1754944e-38, %v1141_v14  ;;  %vm1140_vm3 = vcmp.eq.f32.partialorder %v1139_v55, 8.507059e+37 }
 0xcaa   :  { %v1062_v50 = vadd.f32 %v1061_v10, %v2327_v22 }
 0xcac   :  { %v1579_v11 = vmul.f32 -1.442695, %v1062_v50 }
 0xcad   :  { %v1911_v12 = vpop.eup %1910 }
 0xcae   :  { %1912 = vpow2.f32 %v1579_v11  ;;  %v1131_v57 = vmul.f32 %v1911_v12, %v1129_v9  ;;  %vm1136_vm15 = vweird.f32 %v1911_v12 }
 0xcaf   :  { %1914 = vtanh.f32 %v1124_v53  ;;  %vm1137_vm2 = vmor %vm1135_vm1, %vm1136_vm15 }
 0xcb0   :  { %v1132_v13 = vsub.f32 1.0, %v1131_v57 }
 0xcb2   :  { %v1133_v15 = vmul.f32 %v1911_v12, %v1132_v13 }
 0xcb4   :  { %v1913_v18 = vpop.eup %1912  ;;  %v1134_v58 = vadd.f32 %v1911_v12, %v1133_v15 }
 0xcb5   :  { %v1068_v60 = vadd.f32 1.0, %v1913_v18  ;;  %v1915_v63 = vpop.eup %1914 }
 0xcb6   :  { %v1138_v62 = vsel %vm1137_vm2, %v1911_v12, %v1134_v58 }
 0xcb7   :  { %1916 = vrcp.f32 %v1068_v60  ;;  %v1143_v0 = vsel %vm1140_vm3, %v1142_v61, %v1138_v62  ;;  %v1080_v5 = vand.u32 2147483648, %v1068_v60  ;;  %v1078_v8 = vand.u32 2147483647, %v1068_v60 }
 0xcb8   :  { %v1145_v1 = vsel %vm2214_vm4, %v1915_v63, %v1143_v0  ;;  %1918 = vtanh.f32 %v1062_v50  ;;  %vm1074_vm6 = vweird.f32 %v1068_v60 }
 0xcb9   :  { %1148 = vrot.lane.b32.xlu1 %v1145_v1, %s1966_s11  ;;  %v1081_v19 = vor.u32 1.1754944e-38, %v1080_v5  ;;  %vm1079_vm9 = vcmp.eq.f32.partialorder %v1078_v8, 8.507059e+37  ;;  %v1146_v36 = vmul.f32 %v1145_v1, %v2462_v16 }
 0xcbd   :  { %v1917_v2 = vpop.eup %1916 }
 0xcbe   :  { %v1070_v3 = vmul.f32 %v1917_v2, %v1068_v60  ;;  %vm1075_vm5 = vweird.f32 %v1917_v2  ;;  %v1919_v23 = vpop.eup %1918 }
 0xcbf   :  { %vm1076_vm7 = vmor %vm1074_vm6, %vm1075_vm5 }
 0xcc0   :  { %v1071_v4 = vsub.f32 1.0, %v1070_v3 }
 0xcc2   :  { %v1072_v6 = vmul.f32 %v1917_v2, %v1071_v4 }
 0xcc4   :  { %v1073_v17 = vadd.f32 %v1917_v2, %v1072_v6 }
 0xcc6   :  { %v1077_v20 = vsel %vm1076_vm7, %v1917_v2, %v1073_v17 }
 0xcc7   :  { %v1082_v24 = vsel %vm1079_vm9, %v1081_v19, %v1077_v20 }
 0xcc8   :  { %v1084_v25 = vsel %vm2214_vm4, %v1919_v23, %v1082_v24 }
 0xcc9   :  { %1087 = vrot.lane.b32.xlu0 %v1084_v25, %s1966_s11  ;;  %v1085_v30 = vmul.f32 %v1084_v25, %v2467_v21  ;;  %v374_v21 = vld [vmem:[%s2629_s1 + $0x30] sm:$0xff] }
 0xcca   :  { %1559 = vmatmul.msk.f32.gmra.mxu2 %vm377_vm0, %v374_v21 }
 0xcd2   :  { %1560 = vmatmul.msk.f32.gmra.mxu2 %vm377_vm0, %v375_v47 }
 0xd2b   :  { %v1149_v26 = vpop.permute.xlu1 %1148 }
 0xd2c   :  { %v1151_v27 = vmul.f32 %v1149_v26, %v1145_v1 }
 0xd2e   :  { %1153 = vrot.lane.b32.xlu0 %v1151_v27, %s1967_s12 }
 0xd3b   :  { %v1088_v7 = vpop.permute.xlu0 %1087 }
 0xd3c   :  { %v1090_v28 = vmul.f32 %v1088_v7, %v1084_v25 }
 0xd3e   :  { %1092 = vrot.lane.b32.xlu2 %v1090_v28, %s1967_s12 }
 0xd4d   :  { %v437_v49 = vpop.f32.mrf.mxu2 }
 0xd4e   :  { %v438_v51 = vadd.f32 %v437_v49, %v2211_v40  ;;  %v43_v49 = vld [vmem:[%s2628_s3 + $0xd0] sm:$0xff] }
 0xd55   :  { %v2514_v9 = vpop.f32.mrf.mxu2 }
 0xd98   :  { %v1093_v33 = vpop.permute.xlu2 %1092 }
 0xd99   :  { %v2491_v34 = vadd.f32 %v1093_v33, %v1085_v30 }
 0xd9b   :  { %1920 = vtanh.f32 %v2491_v34 }
 0xda0   :  { %v1154_v37 = vpop.permute.xlu0 %1153 }
 0xda1   :  { %v1921_v41 = vpop.eup %1920  ;;  %v2495_v43 = vadd.f32 %v1154_v37, %v1146_v36 }
 0xda2   :  { %1098 = vrot.lane.b32.xlu1 %v1921_v41, %s1966_s11 }
 0xda3   :  { %1922 = vtanh.f32 %v2495_v43 }
 0xda9   :  { %v1923_v45 = vpop.eup %1922 }
 0xdaa   :  { %1159 = vrot.lane.b32.xlu2 %v1923_v45, %s1966_s11 }
 0xe04   :  { %v1160_v35 = vpop.permute.xlu2 %1159 }
 0xe05   :  { %v1162_v39 = vmul.f32 %v1160_v35, %v1145_v1 }
 0xe07   :  { %1164 = vrot.lane.b32.xlu0 %v1162_v39, %s1967_s12  ;;  %v47_v39 = vld [vmem:[%s2628_s3 + $0xf0] sm:$0xff] }
 0xe14   :  { %v1099_v16 = vpop.permute.xlu1 %1098 }
 0xe15   :  { %v1101_v46 = vmul.f32 %v1099_v16, %v1084_v25  ;;  %v45_v16 = vld [vmem:[%s2628_s3 + $0xe0] sm:$0xff] }
 0xe17   :  { %1168 = vrot.lane.b32.xlu1 %v1101_v46, %s1966_s11 }
 0xe79   :  { %v1165_v44 = vpop.permute.xlu0 %1164 }
 0xe7a   :  { %1584 = vmatmul.msk.f32.vlgmr.msra.gmra.mxu0 %vm377_vm0, %v1165_v44 }
 0xe89   :  { %v1169_v29 = vpop.permute.xlu1 %1168 }
 0xe8a   :  { %v1171_v48 = vsel %vm377_vm0, %v1165_v44, %v1169_v29 }
 0xe8b   :  { %1582 = vmatmul.msk.f32.vlgmr.msra.gmra.mxu2 %vm516_vm8, %v1171_v48  ;;  %v44_v48 = vld [vmem:[%s2628_s3 + $0xd8] sm:$0xff] }
 0xef7   :  { %v1252_v52 = vpop.f32.mrf.mxu0 }
 0xef8   :  { %v1255_v42 = vadd.f32 %v1252_v52, %v438_v51  ;;  %v42_v51 = vld [vmem:[%s2628_s3 + $0xc8] sm:$0xff]  ;;  %v41_v52 = vld [vmem:[%s2628_s3 + $0xc0] sm:$0xff] }
 0xefa   :  { %v1585_v53 = vmul.f32 -1.442695, %v1255_v42 }
 0xefc   :  { %1924 = vpow2.f32 %v1585_v53  ;;  %v346_v53 = vadd.f32 %v2367_v32, %v2203_v38 }
 0xf02   :  { %v1925_v54 = vpop.eup %1924 }
 0xf03   :  { %v1260_v56 = vadd.f32 1.0, %v1925_v54  ;;  %v366_v54 = vadd.f32 %v2365_v31, %v346_v53 }
 0xf05   :  { %1926 = vrcp.f32 %v1260_v56  ;;  %v1272_v13 = vand.u32 2147483648, %v1260_v56  ;;  %v1270_v15 = vand.u32 2147483647, %v1260_v56  ;;  %vm1266_vm11 = vweird.f32 %v1260_v56 }
 0xf06   :  { %1928 = vtanh.f32 %v1255_v42 }
 0xf07   :  { %v1273_v58 = vor.u32 1.1754944e-38, %v1272_v13  ;;  %vm1271_vm13 = vcmp.eq.f32.partialorder %v1270_v15, 8.507059e+37 }
 0xf0b   :  { %v1927_v10 = vpop.eup %1926 }
 0xf0c   :  { %v1262_v50 = vmul.f32 %v1927_v10, %v1260_v56  ;;  %vm1267_vm10 = vweird.f32 %v1927_v10  ;;  %v1929_v61 = vpop.eup %1928 }
 0xf0d   :  { %vm1268_vm12 = vmor %vm1266_vm11, %vm1267_vm10 }
 0xf0e   :  { %v1192_v11 = vpop.f32.mrf.mxu2  ;;  %v1263_v12 = vsub.f32 1.0, %v1262_v50  ;;  %v441_v50 = vadd.f32 %v2514_v9, %v2211_v40 }
 0xf0f   :  { %v1193_v57 = vadd.f32 %v1192_v11, %v2327_v22 }
 0xf10   :  { %v1264_v14 = vmul.f32 %v1927_v10, %v1263_v12 }
 0xf11   :  { %v1583_v55 = vmul.f32 -1.442695, %v1193_v57 }
 0xf12   :  { %v1265_v18 = vadd.f32 %v1927_v10, %v1264_v14 }
 0xf13   :  { %1930 = vpow2.f32 %v1583_v55 }
 0xf14   :  { %v1269_v60 = vsel %vm1268_vm12, %v1927_v10, %v1265_v18 }
 0xf15   :  { %v1274_v62 = vsel %vm1271_vm13, %v1273_v58, %v1269_v60 }
 0xf16   :  { %v1276_v63 = vsel %vm2214_vm4, %v1929_v61, %v1274_v62 }
 0xf17   :  { %1279 = vrot.lane.b32.xlu2 %v1276_v63, %s1966_s11  ;;  %v1277_v30 = vmul.f32 %v1276_v63, %v2495_v43  ;;  %v48_v43 = vld [vmem:[%s2628_s3 + $0xf8] sm:$0xff] }
 0xf18   :  { %1534 = vmatpush.msrb.mxu3 %v48_v43 }
 0xf19   :  { %v1931_v0 = vpop.eup %1930 }
 0xf1a   :  { %v1199_v1 = vadd.f32 1.0, %v1931_v0  ;;  %1535 = vmatpush.msrb.mxu3 %v47_v39 }
 0xf1c   :  { %1932 = vrcp.f32 %v1199_v1  ;;  %v1211_v5 = vand.u32 2147483648, %v1199_v1  ;;  %v1209_v8 = vand.u32 2147483647, %v1199_v1  ;;  %vm1205_vm15 = vweird.f32 %v1199_v1 }
 0xf1d   :  { %1934 = vtanh.f32 %v1193_v57 }
 0xf1e   :  { %v1212_v19 = vor.u32 1.1754944e-38, %v1211_v5  ;;  %vm1210_vm2 = vcmp.eq.f32.partialorder %v1209_v8, 8.507059e+37 }
 0xf22   :  { %v1933_v2 = vpop.eup %1932 }
 0xf23   :  { %v1201_v3 = vmul.f32 %v1933_v2, %v1199_v1  ;;  %vm1206_vm14 = vweird.f32 %v1933_v2  ;;  %v1935_v23 = vpop.eup %1934 }
 0xf24   :  { %vm1207_vm1 = vmor %vm1205_vm15, %vm1206_vm14 }
 0xf25   :  { %v1202_v4 = vsub.f32 1.0, %v1201_v3 }
 0xf27   :  { %v1203_v6 = vmul.f32 %v1933_v2, %v1202_v4 }
 0xf29   :  { %v1204_v17 = vadd.f32 %v1933_v2, %v1203_v6 }
 0xf2b   :  { %v1208_v20 = vsel %vm1207_vm1, %v1933_v2, %v1204_v17 }
 0xf2c   :  { %v1213_v24 = vsel %vm1210_vm2, %v1212_v19, %v1208_v20 }
 0xf2d   :  { %v1215_v25 = vsel %vm2214_vm4, %v1935_v23, %v1213_v24 }
 0xf2e   :  { %1218 = vrot.lane.b32.xlu0 %v1215_v25, %s1966_s11  ;;  %v1216_v41 = vmul.f32 %v1215_v25, %v2491_v34  ;;  %v46_v34 = vld [vmem:[%s2628_s3 + $0xe8] sm:$0xff] }
 0xf2f   :  { %1536 = vmatpush.msrb.mxu3 %v46_v34 }
 0xf31   :  { %1537 = vmatpush.msrb.mxu3 %v45_v16 }
 0xf33   :  { %1538 = vmatpush.msrb.mxu3 %v44_v48 }
 0xf35   :  { %1539 = vmatpush.msrb.mxu3 %v43_v49 }
 0xf37   :  { %1540 = vmatpush.msrb.mxu3 %v42_v51 }
 0xf39   :  { %1541 = vmatpush.msrb.mxu3 %v41_v52 }
 0xf71   :  { %v1280_v26 = vpop.permute.xlu2 %1279 }
 0xf72   :  { %v1282_v27 = vmul.f32 %v1280_v26, %v1276_v63 }
 0xf74   :  { %1284 = vrot.lane.b32.xlu1 %v1282_v27, %s1967_s12 }
 0xfa0   :  { %v1219_v7 = vpop.permute.xlu0 %1218 }
 0xfa1   :  { %v1221_v28 = vmul.f32 %v1219_v7, %v1215_v25 }
 0xfa3   :  { %1223 = vrot.lane.b32.xlu2 %v1221_v28, %s1967_s12 }
 0xfe6   :  { %v1285_v33 = vpop.permute.xlu1 %1284 }
 0xfe7   :  { %v2526_v36 = vadd.f32 %v1285_v33, %v1277_v30 }
 0xfe9   :  { %1936 = vtanh.f32 %v2526_v36 }
 0xfef   :  { %v1937_v37 = vpop.eup %1936 }
 0xff0   :  { %1290 = vrot.lane.b32.xlu0 %v1937_v37, %s1966_s11 }
 0xffd   :  { %v1224_v45 = vpop.permute.xlu2 %1223 }
 0xffe   :  { %v2531_v21 = vadd.f32 %v1224_v45, %v1216_v41 }
0x1000   :  { %1938 = vtanh.f32 %v2531_v21 }
0x1006   :  { %v1939_v35 = vpop.eup %1938 }
0x1007   :  { %1229 = vrot.lane.b32.xlu1 %v1939_v35, %s1966_s11 }
0x1062   :  { %v1291_v46 = vpop.permute.xlu0 %1290 }
0x1063   :  { %v1293_v47 = vmul.f32 %v1291_v46, %v1276_v63 }
0x1065   :  { %1295 = vrot.lane.b32.xlu2 %v1293_v47, %s1967_s12 }
0x1079   :  { %v1230_v44 = vpop.permute.xlu1 %1229 }
0x107a   :  { %v1232_v29 = vmul.f32 %v1230_v44, %v1215_v25 }
0x107c   :  { %1299 = vrot.lane.b32.xlu0 %v1232_v29, %s1966_s11 }
0x10bf   :  { %v1296_v42 = vpop.permute.xlu2 %1295 }
0x10c0   :  { %1588 = vmatmul.msk.f32.vlgmr.msra.gmra.mxu3 %vm377_vm0, %v1296_v42 }
0x10c8   :  { %1593 = vmatmul.msk.f32.vlgmr.msrb.gmra.mxu3 %vm516_vm8, %v366_v54 }
0x10ee   :  { %v1300_v56 = vpop.permute.xlu0 %1299 }
0x10ef   :  { %v1302_v10 = vsel %vm377_vm0, %v1296_v42, %v1300_v56 }
0x10f0   :  { %1586 = vmatmul.msk.f32.vlgmr.msra.gmra.mxu1 %vm516_vm8, %v1302_v10 }
0x1143   :  { %v1383_v11 = vpop.f32.mrf.mxu3 }
0x1144   :  { %v1386_v12 = vadd.f32 %v1383_v11, %v441_v50 }
0x1146   :  { %v1589_v57 = vmul.f32 -1.442695, %v1386_v12 }
0x1148   :  { %1940 = vpow2.f32 %v1589_v57 }
0x114e   :  { %v1941_v13 = vpop.eup %1940 }
0x114f   :  { %v1391_v14 = vadd.f32 1.0, %v1941_v13 }
0x1151   :  { %1942 = vrcp.f32 %v1391_v14  ;;  %v1403_v15 = vand.u32 2147483648, %v1391_v14  ;;  %v1401_v18 = vand.u32 2147483647, %v1391_v14  ;;  %vm1397_vm5 = vweird.f32 %v1391_v14 }
0x1152   :  { %1944 = vtanh.f32 %v1386_v12 }
0x1153   :  { %v1404_v60 = vor.u32 1.1754944e-38, %v1403_v15  ;;  %vm1402_vm7 = vcmp.eq.f32.partialorder %v1401_v18, 8.507059e+37 }
0x1157   :  { %v1943_v38 = vpop.eup %1942 }
0x1158   :  { %v1393_v32 = vmul.f32 %v1943_v38, %v1391_v14  ;;  %vm1398_vm3 = vweird.f32 %v1943_v38  ;;  %v1945_v9 = vpop.eup %1944 }
0x1159   :  { %vm1399_vm6 = vmor %vm1397_vm5, %vm1398_vm3 }
0x115a   :  { %v1394_v31 = vsub.f32 1.0, %v1393_v32 }
0x115c   :  { %v1395_v55 = vmul.f32 %v1943_v38, %v1394_v31 }
0x115e   :  { %v1396_v58 = vadd.f32 %v1943_v38, %v1395_v55 }
0x1160   :  { %v1400_v40 = vsel %vm1399_vm6, %v1943_v38, %v1396_v58 }
0x1161   :  { %v1405_v61 = vsel %vm1402_vm7, %v1404_v60, %v1400_v40  ;;  %v40_v40 = vld [vmem:[%s2628_s3 + $0xb8] sm:$0xff] }
0x1162   :  { %v1407_v62 = vsel %vm2214_vm4, %v1945_v9, %v1405_v61  ;;  %1511 = vmatpush.msrb.mxu2 %v40_v40  ;;  %v38_v9 = vld [vmem:[%s2628_s3 + $0xa8] sm:$0xff]  ;;  %v37_v61 = vld [vmem:[%s2628_s3 + $0xa0] sm:$0xff] }
0x1163   :  { %1410 = vrot.lane.b32.xlu2 %v1407_v62, %s1966_s11  ;;  %v1408_v37 = vmul.f32 %v1407_v62, %v2526_v36 }
0x1164   :  { %1512 = vmatpush.msrb.mxu2 %v39_v59 }
0x1166   :  { %1513 = vmatpush.msrb.mxu2 %v38_v9 }
0x1168   :  { %1514 = vmatpush.msrb.mxu2 %v37_v61 }
0x116d   :  { %v1323_v63 = vpop.f32.mrf.mxu1 }
0x116e   :  { %v1324_v0 = vadd.f32 %v1323_v63, %v2327_v22  ;;  %v35_v63 = vld [vmem:[%s2628_s3 + $0x90] sm:$0xff] }
0x1170   :  { %v1587_v1 = vmul.f32 -1.442695, %v1324_v0 }
0x1172   :  { %1946 = vpow2.f32 %v1587_v1 }
0x1178   :  { %v1947_v2 = vpop.eup %1946 }
0x1179   :  { %v1330_v3 = vadd.f32 1.0, %v1947_v2 }
0x117b   :  { %1948 = vrcp.f32 %v1330_v3  ;;  %v1342_v8 = vand.u32 2147483648, %v1330_v3  ;;  %v1340_v19 = vand.u32 2147483647, %v1330_v3  ;;  %vm1336_vm10 = vweird.f32 %v1330_v3 }
0x117c   :  { %1950 = vtanh.f32 %v1324_v0  ;;  %v34_v0 = vld [vmem:[%s2628_s3 + $0x88] sm:$0xff] }
0x117d   :  { %v1343_v23 = vor.u32 1.1754944e-38, %v1342_v8  ;;  %vm1341_vm12 = vcmp.eq.f32.partialorder %v1340_v19, 8.507059e+37 }
0x1181   :  { %v1949_v4 = vpop.eup %1948 }
0x1182   :  { %v1332_v5 = vmul.f32 %v1949_v4, %v1330_v3  ;;  %vm1337_vm9 = vweird.f32 %v1949_v4  ;;  %v1951_v25 = vpop.eup %1950  ;;  %v33_v3 = vld [vmem:[%s2628_s3 + $0x80] sm:$0xff] }
0x1183   :  { %vm1338_vm11 = vmor %vm1336_vm10, %vm1337_vm9 }
0x1184   :  { %v1333_v6 = vsub.f32 1.0, %v1332_v5 }
0x1186   :  { %v1334_v17 = vmul.f32 %v1949_v4, %v1333_v6  ;;  %v1964_v6 = vld [vmem:[%s2628_s3 + $0x100] sm:$0xff] }
0x1187   :  { %v1546_v8 = vperm.slane %v1964_v6, 2 }
0x1188   :  { %v1335_v20 = vadd.f32 %v1949_v4, %v1334_v17  ;;  %v1543_v17 = vpop.f32.mrf.mxu3 }
0x118a   :  { %v1339_v24 = vsel %vm1338_vm11, %v1949_v4, %v1335_v20 }
0x118b   :  { %v1344_v26 = vsel %vm1341_vm12, %v1343_v23, %v1339_v24 }
0x118c   :  { %v1346_v27 = vsel %vm2214_vm4, %v1951_v25, %v1344_v26 }
0x118d   :  { %1349 = vrot.lane.b32.xlu1 %v1346_v27, %s1966_s11  ;;  %v1347_v43 = vmul.f32 %v1346_v27, %v2531_v21 }
0x11bd   :  { %v1411_v7 = vpop.permute.xlu2 %1410 }
0x11be   :  { %v1413_v28 = vmul.f32 %v1411_v7, %v1407_v62 }
0x11c0   :  { %1415 = vrot.lane.b32.xlu1 %v1413_v28, %s1967_s12 }
0x11ff   :  { %v1350_v30 = vpop.permute.xlu1 %1349 }
0x1200   :  { %v1352_v33 = vmul.f32 %v1350_v30, %v1346_v27 }
0x1202   :  { %1354 = vrot.lane.b32.xlu0 %v1352_v33, %s1967_s12 }
0x1232   :  { %v1416_v41 = vpop.permute.xlu1 %1415 }
0x1233   :  { %v1418_v45 = vadd.f32 %v1416_v41, %v1408_v37 }
0x1235   :  { %1952 = vtanh.f32 %v1418_v45 }
0x123b   :  { %v1953_v35 = vpop.eup %1952 }
0x123c   :  { %1421 = vrot.lane.b32.xlu0 %v1953_v35, %s1966_s11 }
0x1274   :  { %v1355_v39 = vpop.permute.xlu0 %1354 }
0x1275   :  { %v1357_v34 = vadd.f32 %v1355_v39, %v1347_v43 }
0x1277   :  { %1954 = vtanh.f32 %v1357_v34 }
0x127d   :  { %v1955_v16 = vpop.eup %1954 }
0x127e   :  { %1360 = vrot.lane.b32.xlu2 %v1955_v16, %s1966_s11 }
0x12ae   :  { %v1422_v46 = vpop.permute.xlu0 %1421 }
0x12af   :  { %v1424_v47 = vmul.f32 %v1422_v46, %v1407_v62  ;;  %v36_v62 = vld [vmem:[%s2628_s3 + $0x98] sm:$0xff] }
0x12b0   :  { %1515 = vmatpush.msrb.mxu2 %v36_v62 }
0x12b1   :  { %1426 = vrot.lane.b32.xlu1 %v1424_v47, %s1967_s12 }
0x12b2   :  { %1516 = vmatpush.msrb.mxu2 %v35_v63 }
0x12b4   :  { %1517 = vmatpush.msrb.mxu2 %v34_v0 }
0x12b6   :  { %1518 = vmatpush.msrb.mxu2 %v33_v3 }
0x12d8   :  { %v1361_v44 = vpop.permute.xlu2 %1360 }
0x12d9   :  { %v1363_v36 = vmul.f32 %v1361_v44, %v1346_v27 }
0x12db   :  { %1430 = vrot.lane.b32.xlu2 %v1363_v36, %s1966_s11 }
0x1323   :  { %v1427_v29 = vpop.permute.xlu1 %1426 }
0x1335   :  { %v1431_v48 = vpop.permute.xlu2 %1430 }
0x1336   :  { %v1433_v49 = vsel %vm377_vm0, %v1427_v29, %v1431_v48 }
0x1337   :  { %1590 = vmatmul.msk.f32.vlgmr.msrb.gmra.mxu0 %vm516_vm8, %v1433_v49 }
0x13b4   :  { %v1454_v21 = vpop.f32.mrf.mxu0 }
0x13b5   :  { %v1455_v51 = vadd.f32 %v1454_v21, %v2327_v22 }
0x13b7   :  { %v1591_v52 = vmul.f32 -1.442695, %v1455_v51 }
0x13b9   :  { %1956 = vpow2.f32 %v1591_v52 }
0x13bf   :  { %v1957_v42 = vpop.eup %1956 }
0x13c0   :  { %v1461_v53 = vadd.f32 1.0, %v1957_v42 }
0x13c2   :  { %1958 = vrcp.f32 %v1461_v53  ;;  %v1473_v50 = vand.u32 2147483648, %v1461_v53  ;;  %v1471_v12 = vand.u32 2147483647, %v1461_v53  ;;  %vm1467_vm14 = vweird.f32 %v1461_v53 }
0x13c3   :  { %1960 = vtanh.f32 %v1455_v51 }
0x13c4   :  { %v1474_v13 = vor.u32 1.1754944e-38, %v1473_v50  ;;  %vm1472_vm1 = vcmp.eq.f32.partialorder %v1471_v12, 8.507059e+37 }
0x13c8   :  { %v1959_v54 = vpop.eup %1958 }
0x13c9   :  { %v1463_v56 = vmul.f32 %v1959_v54, %v1461_v53  ;;  %vm1468_vm13 = vweird.f32 %v1959_v54  ;;  %v1961_v22 = vpop.eup %1960 }
0x13ca   :  { %vm1469_vm15 = vmor %vm1467_vm14, %vm1468_vm13 }
0x13cb   :  { %v1464_v10 = vsub.f32 1.0, %v1463_v56 }
0x13cd   :  { %v1465_v11 = vmul.f32 %v1959_v54, %v1464_v10 }
0x13cf   :  { %v1466_v57 = vadd.f32 %v1959_v54, %v1465_v11 }
0x13d1   :  { %v1470_v14 = vsel %vm1469_vm15, %v1959_v54, %v1466_v57 }
0x13d2   :  { %v1475_v38 = vsel %vm1472_vm1, %v1474_v13, %v1470_v14 }
0x13d3   :  { %v1477_v32 = vsel %vm2214_vm4, %v1961_v22, %v1475_v38 }
0x13d4   :  { %1480 = vrot.lane.b32.xlu0 %v1477_v32, %s1966_s11  ;;  %v1478_v55 = vmul.f32 %v1477_v32, %v1357_v34 }
0x1446   :  { %v1481_v31 = vpop.permute.xlu0 %1480 }
0x1447   :  { %v1483_v15 = vmul.f32 %v1481_v31, %v1477_v32 }
0x1449   :  { %1485 = vrot.lane.b32.xlu1 %v1483_v15, %s1967_s12 }
0x14bb   :  { %v1486_v18 = vpop.permute.xlu1 %1485 }
0x14bc   :  { %v1488_v58 = vadd.f32 %v1486_v18, %v1478_v55 }
0x14be   :  { %1962 = vtanh.f32 %v1488_v58 }
0x14c4   :  { %v1963_v60 = vpop.eup %1962 }
0x14c5   :  { %1491 = vrot.lane.b32.xlu2 %v1963_v60, %s1966_s11 }
0x151f   :  { %v1492_v1 = vpop.permute.xlu2 %1491 }
0x1520   :  { %v1494_v2 = vmul.f32 %v1492_v1, %v1477_v32 }
0x1522   :  { %1496 = vrot.lane.b32.xlu0 %v1494_v2, %s1966_s11 }
0x1594   :  { %v1497_v4 = vpop.permute.xlu0 %1496 }
0x1595   :  { %v1499_v5 = vsel %vm377_vm0, %v1427_v29, %v1497_v4 }
0x1596   :  { %1592 = vmatmul.msk.f32.vlgmr.msrb.gmra.mxu2 %vm516_vm8, %v1499_v5 }
0x1619   :  { %v1520_v19 = vpop.f32.mrf.mxu2 }
0x161a   :  { %v1544_v20 = vadd.f32 %v1543_v17, %v1520_v19 }
0x161c   :  { %v1547_v23 = vadd.f32 %v1546_v8, %v1544_v20 }
0x161e   :  { %1548 = vst [vmem:[%s2630_s4] sm:$0xff] %v1547_v23 }

</bundles_post_ra>
